<compile_context>
chip_gen: v6e
topology: v6e:2x2x1
jax: 0.10.0
libtpu: 0.0.40
codegen_flags: <defaults>
</compile_context>

<pallas_src>
import functools
import math

import jax
import jax.numpy as jnp
from jax.experimental import pallas as pl
from jax.experimental.pallas import tpu as pltpu


def _round_up(a, m):
    return (a + m - 1) // m * m


def _fused_ae_kernel(g_ref, w1_ref, b1_ref, w2_ref, b2_ref, w3_ref, b3_ref,
                     w4_ref, b4_ref, o_ref, *, tile_t, seq_len):
    """One (batch, T-tile) step of the fused 4-layer network.

    g_ref : (tile_t + 8, 7*Cin)  im2col'd conv1 input, rows <-> positions t0-4 .. t0+tile_t+3
    wX_ref: relayed-out weights (tap-major, channels-last), bX_ref: (1, C) f32 biases
    o_ref : (tile_t, Cout)       final output rows for positions t0 .. t0+tile_t-1
    """
    f32 = jnp.float32
    cdt = w2_ref.dtype                      # matmul-operand (compute) dtype
    oi = pl.program_id(1)
    t0 = oi * tile_t                        # first output position of this tile

    def clamp_edges(act, off):
        # act rows r correspond to sequence positions (t0 - off + r).  Rows whose
        # position falls outside [0, seq_len) must equal the boundary rows
        # (PyTorch replicate-pads every layer's input, i.e. the intermediates).
        R = act.shape[0]
        pos = jax.lax.broadcasted_iota(jnp.int32, (R, 1), 0) + (t0 - off)
        # Low side: only the first tile can have pos < 0, and there the row at
        # static index `off` is exactly position 0.
        low = act[off:off + 1, :]
        # High side: extract the row at position seq_len-1 (present whenever any
        # row has pos >= seq_len) with an exact one-hot masked sum.
        hi_sel = (pos == seq_len - 1).astype(f32)
        high = jnp.sum(hi_sel * act, axis=0, keepdims=True)
        act = jnp.where(pos < 0, low, act)
        act = jnp.where(pos > seq_len - 1, high, act)
        return act

    # ---- conv1 (K=7) as one im2col matmul: (tile+8, 28) @ (28, 128) ----
    h1 = jnp.dot(g_ref[...], w1_ref[...], preferred_element_type=f32)
    h1 = jnp.maximum(h1 + b1_ref[...], 0.0)
    # No clamp needed: the wrapper builds the im2col rows with per-position
    # replicate padding, so halo rows already equal the boundary rows of h1.
    h1 = h1.astype(cdt)

    # ---- conv2 (K=5): rows <-> positions t0-2+r ----
    r2 = tile_t + 4
    acc = jnp.zeros((r2, w2_ref.shape[2]), f32)
    for k in range(5):                      # static unrolled taps, contraction = 128
        acc += jnp.dot(h1[k:k + r2, :], w2_ref[k], preferred_element_type=f32)
    h2 = jnp.maximum(acc + b2_ref[...], 0.0)
    h2 = clamp_edges(h2, 2).astype(cdt)

    # ---- conv3 (K=3): rows <-> positions t0-1+r ----
    r3 = tile_t + 2
    acc = jnp.zeros((r3, w3_ref.shape[2]), f32)
    for k in range(3):                      # contraction = 256
        acc += jnp.dot(h2[k:k + r3, :], w3_ref[k], preferred_element_type=f32)
    h3 = jnp.maximum(acc + b3_ref[...], 0.0)
    h3 = clamp_edges(h3, 1).astype(cdt)

    # ---- conv4 (K=3, no ReLU): rows <-> positions t0+r ----
    acc = jnp.zeros((tile_t, w4_ref.shape[2]), f32)
    for k in range(3):
        acc += jnp.dot(h3[k:k + tile_t, :], w4_ref[k], preferred_element_type=f32)
    out = acc + b4_ref[...]
    o_ref[...] = out.astype(o_ref.dtype)


def _autoencoder_apply(params, x, compute_dtype, tile_t):
    B, T, Cin = x.shape
    w1, b1 = params["conv1"]
    w2, b2 = params["conv2"]
    w3, b3 = params["conv3"]
    w4, b4 = params["conv4"]
    C1 = w1.shape[0]
    C2 = w2.shape[0]
    C3 = w3.shape[0]
    Cout = w4.shape[0]
    assert (w1.shape[2], w2.shape[2], w3.shape[2], w4.shape[2]) == (7, 5, 3, 3)

    if tile_t is None:
        tile_t = _round_up(T, 8) if T <= 1024 else 512
    assert tile_t >= 8 and tile_t % 8 == 0, tile_t
    tT = tile_t
    T_pad = _round_up(T, tT)
    n_tiles = T_pad // tT
    pad_t = T_pad - T
    cdt = compute_dtype
    kc = 7 * Cin

    # --- Build the im2col'd conv1 input once (replicate padding done here only). ---
    xc = x.astype(cdt)
    x3 = jnp.pad(xc, ((0, 0), (3, 3), (0, 0)), mode="edge")                # conv1's replicate pad
    g = jnp.concatenate([x3[:, k:k + T, :] for k in range(7)], axis=-1)    # (B, T, 28): row t = conv1 window at t
    # Halo rows for the downstream layers (+4 each side) and padding to a multiple
    # of the tile; edge mode makes h1 at out-of-range positions equal h1[0]/h1[T-1],
    # i.e. exactly PyTorch's replicate padding of h1.
    g = jnp.pad(g, ((0, 0), (4, 4 + pad_t), (0, 0)), mode="edge")          # (B, T_pad + 8, 28)
    # Blocked-with-halo layout so the Pallas BlockSpecs stay non-overlapping:
    # block oi holds rows for positions [oi*tT - 4, oi*tT + tT + 4).
    g = jnp.pad(g, ((0, 0), (0, tT - 8), (0, 0)))                          # (B, (n_tiles+1)*tT, 28)
    gb = g.reshape(B, n_tiles + 1, tT, kc)
    g_blocked = jnp.concatenate([gb[:, :n_tiles], gb[:, 1:, :8]], axis=2)  # (B, n_tiles, tT+8, 28)

    # --- Weight / bias relayout (tap-major, channels-last); operands in compute dtype. ---
    w1m = jnp.transpose(w1, (2, 1, 0)).reshape(kc, C1).astype(cdt)         # (28, 128), index k*Cin+cin
    w2m = jnp.transpose(w2, (2, 1, 0)).astype(cdt)                         # (5, 128, 256)
    w3m = jnp.transpose(w3, (2, 1, 0)).astype(cdt)                         # (3, 256, 128)
    w4m = jnp.transpose(w4, (2, 1, 0)).astype(cdt)                         # (3, 128, Cout)
    b1m = b1.reshape(1, C1).astype(jnp.float32)
    b2m = b2.reshape(1, C2).astype(jnp.float32)
    b3m = b3.reshape(1, C3).astype(jnp.float32)
    b4m = b4.reshape(1, Cout).astype(jnp.float32)

    kernel = functools.partial(_fused_ae_kernel, tile_t=tT, seq_len=T)
    out_blocked = pl.pallas_call(
        kernel,
        out_shape=jax.ShapeDtypeStruct((B, n_tiles, tT, Cout), x.dtype),
        grid_spec=pltpu.PrefetchScalarGridSpec(
            num_scalar_prefetch=0,
            grid=(B, n_tiles),
            in_specs=[
                pl.BlockSpec((None, None, tT + 8, kc), lambda b, i: (b, i, 0, 0)),
                pl.BlockSpec((kc, C1), lambda b, i: (0, 0)),
                pl.BlockSpec((1, C1), lambda b, i: (0, 0)),
                pl.BlockSpec((5, C1, C2), lambda b, i: (0, 0, 0)),
                pl.BlockSpec((1, C2), lambda b, i: (0, 0)),
                pl.BlockSpec((3, C2, C3), lambda b, i: (0, 0, 0)),
                pl.BlockSpec((1, C3), lambda b, i: (0, 0)),
                pl.BlockSpec((3, C3, Cout), lambda b, i: (0, 0, 0)),
                pl.BlockSpec((1, Cout), lambda b, i: (0, 0)),
            ],
            out_specs=pl.BlockSpec((None, None, tT, Cout), lambda b, i: (b, i, 0, 0)),
        ),
        compiler_params=pltpu.CompilerParams(
            dimension_semantics=("parallel", "parallel"),
            vmem_limit_bytes=32 * 1024 * 1024,
        ),
    )(g_blocked, w1m, b1m, w2m, b2m, w3m, b3m, w4m, b4m)

    out = out_blocked.reshape(B, T_pad, Cout)[:, :T, :]
    return out


@functools.partial(jax.jit, static_argnames=("compute_dtype", "tile_t"))
def autoencoder_forward(params, x, compute_dtype=jnp.bfloat16, tile_t=None):
    """x: (B, T, in_dim) -> (B, T, out_dim), matching AutoEncoder.forward."""
    return _autoencoder_apply(params, x, compute_dtype, tile_t)


def init_conv_params(key, cout, cin, k, dtype=jnp.float32):
    # PyTorch default Conv1d init: U(-bound, bound), bound = 1/sqrt(cin * k)
    kw, kb = jax.random.split(key)
    bound = 1.0 / math.sqrt(cin * k)
    w = jax.random.uniform(kw, (cout, cin, k), dtype, minval=-bound, maxval=bound)
    b = jax.random.uniform(kb, (cout,), dtype, minval=-bound, maxval=bound)
    return w, b


def make_autoencoder_params(key, in_dim, z_dim, out_dim):
    # z_dim is unused in the reference forward pass (matching the PyTorch module).
    k1, k2, k3, k4 = jax.random.split(key, 4)
    return {
        "conv1": init_conv_params(k1, 128, in_dim, 7),
        "conv2": init_conv_params(k2, 256, 128, 5),
        "conv3": init_conv_params(k3, 128, 256, 3),
        "conv4": init_conv_params(k4, out_dim, 128, 3),
    }


def autoencoder_reference(params, x):
    # Plain-JAX reference (per-layer replicate padding), used for self-checking.
    def conv(h, w, b, relu):
        K = w.shape[2]
        pad = (K - 1) // 2
        T = h.shape[1]
        hp = jnp.pad(h, ((0, 0), (pad, pad), (0, 0)), mode="edge")
        y = sum(jnp.einsum("btc,oc->bto", hp[:, k:k + T, :], w[:, :, k]) for k in range(K))
        y = y + b
        return jnp.maximum(y, 0.0) if relu else y

    h = conv(x, *params["conv1"], True)
    h = conv(h, *params["conv2"], True)
    h = conv(h, *params["conv3"], True)
    return conv(h, *params["conv4"], False)


if __name__ == "__main__":
    B, T = 2, 16
    in_dim, z_dim, out_dim = 4, 8, 4

    key = jax.random.PRNGKey(0)
    k_params, k_x, k_x2 = jax.random.split(key, 3)
    params = make_autoencoder_params(k_params, in_dim, z_dim, out_dim)
    x = jax.random.normal(k_x, (B, T, in_dim), dtype=jnp.float32)

    # Production path: bf16 matmul operands, f32 accumulation.
    out = autoencoder_forward(params, x)
    jax.block_until_ready(out)
    assert out.shape == (B, T, out_dim), out.shape

    # Self-check the fused/tiled kernel (f32 compute path) against a plain-JAX
    # reference, both at the toy shape and at a multi-tile shape (halo + padding).
    ref = autoencoder_reference(params, x)
    out_f32 = autoencoder_forward(params, x, compute_dtype=jnp.float32)
    tol = 0.05 * max(1.0, float(jnp.max(jnp.abs(ref))))
    err = float(jnp.max(jnp.abs(out_f32 - ref)))
    assert err <= tol, (err, tol)

    x2 = jax.random.normal(k_x2, (B, 300, in_dim), dtype=jnp.float32)
    ref2 = autoencoder_reference(params, x2)
    out2 = autoencoder_forward(params, x2, compute_dtype=jnp.float32, tile_t=64)
    tol2 = 0.05 * max(1.0, float(jnp.max(jnp.abs(ref2))))
    err2 = float(jnp.max(jnp.abs(out2 - ref2)))
    assert err2 <= tol2, (err2, tol2)

    print("KERNEL_OK")
</pallas_src>

<mosaic_0001>
module attributes {stable_mosaic.version = 11 : i64} {
  func.func @_fused_ae_kernel(%arg0: i32, %arg1: i32, %arg2: memref<1x1x24x28xbf16, #tpu.memory_space<vmem>>, %arg3: memref<28x128xbf16, #tpu.memory_space<vmem>>, %arg4: memref<1x128xf32, #tpu.memory_space<vmem>>, %arg5: memref<5x128x256xbf16, #tpu.memory_space<vmem>>, %arg6: memref<1x256xf32, #tpu.memory_space<vmem>>, %arg7: memref<3x256x128xbf16, #tpu.memory_space<vmem>>, %arg8: memref<1x128xf32, #tpu.memory_space<vmem>>, %arg9: memref<3x128x4xbf16, #tpu.memory_space<vmem>>, %arg10: memref<1x4xf32, #tpu.memory_space<vmem>>, %arg11: memref<1x1x16x4xf32, #tpu.memory_space<vmem>>) attributes {dimension_semantics = [#tpu.dimension_semantics<parallel>, #tpu.dimension_semantics<parallel>], iteration_bounds = array<i64: 2, 1>, scalar_prefetch = 0 : i64, scratch_operands = 0 : i64, tpu.core_type = #tpu.core_type<tc>, window_params = [{transform_indices = @transform_0, window_bounds = array<i64: 1, 1, 24, 28>}, {pipeline_mode = #tpu.pipeline_mode<synchronous>, transform_indices = @transform_1, window_bounds = array<i64: 28, 128>}, {pipeline_mode = #tpu.pipeline_mode<synchronous>, transform_indices = @transform_2, window_bounds = array<i64: 1, 128>}, {pipeline_mode = #tpu.pipeline_mode<synchronous>, transform_indices = @transform_3, window_bounds = array<i64: 5, 128, 256>}, {pipeline_mode = #tpu.pipeline_mode<synchronous>, transform_indices = @transform_4, window_bounds = array<i64: 1, 256>}, {pipeline_mode = #tpu.pipeline_mode<synchronous>, transform_indices = @transform_5, window_bounds = array<i64: 3, 256, 128>}, {pipeline_mode = #tpu.pipeline_mode<synchronous>, transform_indices = @transform_6, window_bounds = array<i64: 1, 128>}, {pipeline_mode = #tpu.pipeline_mode<synchronous>, transform_indices = @transform_7, window_bounds = array<i64: 3, 128, 4>}, {pipeline_mode = #tpu.pipeline_mode<synchronous>, transform_indices = @transform_8, window_bounds = array<i64: 1, 4>}, {transform_indices = @transform_9, window_bounds = array<i64: 1, 1, 16, 4>}]} {
    %c16_i32 = arith.constant 16 : i32
    %0 = arith.muli %arg1, %c16_i32 : i32
    %c0 = arith.constant 0 : index
    %c0_0 = arith.constant 0 : index
    %c0_1 = arith.constant 0 : index
    %c0_2 = arith.constant 0 : index
    %1 = vector.load %arg2[%c0, %c0_0, %c0_1, %c0_2] : memref<1x1x24x28xbf16, #tpu.memory_space<vmem>>, vector<1x1x24x28xbf16>
    %2 = vector.shape_cast %1 : vector<1x1x24x28xbf16> to vector<24x28xbf16>
    %c0_3 = arith.constant 0 : index
    %c0_4 = arith.constant 0 : index
    %3 = vector.load %arg3[%c0_3, %c0_4] : memref<28x128xbf16, #tpu.memory_space<vmem>>, vector<28x128xbf16>
    %cst = arith.constant dense<0.000000e+00> : vector<24x128xf32>
    %4 = tpu.matmul %2, %3, %cst {dimension_numbers = #tpu.dot_dimension_numbers<[1], [0], [0], [1], [0, 0, 1, 1], [], []>} : vector<24x28xbf16>, vector<28x128xbf16>, vector<24x128xf32> -> vector<24x128xf32>
    %c0_5 = arith.constant 0 : index
    %c0_6 = arith.constant 0 : index
    %5 = vector.load %arg4[%c0_5, %c0_6] : memref<1x128xf32, #tpu.memory_space<vmem>>, vector<1x128xf32>
    %6 = vector.broadcast %5 : vector<1x128xf32> to vector<24x128xf32>
    %7 = arith.addf %4, %6 : vector<24x128xf32>
    %cst_7 = arith.constant 0.000000e+00 : f32
    %8 = vector.broadcast %cst_7 : f32 to vector<24x128xf32>
    %9 = arith.maximumf %7, %8 : vector<24x128xf32>
    %10 = arith.truncf %9 : vector<24x128xf32> to vector<24x128xbf16>
    %cst_8 = arith.constant 0.000000e+00 : f32
    %11 = vector.broadcast %cst_8 : f32 to vector<20x256xf32>
    %12 = vector.extract_strided_slice %10 {offsets = [0, 0], sizes = [20, 128], strides = [1, 1]} : vector<24x128xbf16> to vector<20x128xbf16>
    %c0_9 = arith.constant 0 : index
    %c0_10 = arith.constant 0 : index
    %c0_11 = arith.constant 0 : index
    %13 = vector.load %arg5[%c0_9, %c0_10, %c0_11] : memref<5x128x256xbf16, #tpu.memory_space<vmem>>, vector<1x128x256xbf16>
    %14 = vector.shape_cast %13 : vector<1x128x256xbf16> to vector<128x256xbf16>
    %cst_12 = arith.constant dense<0.000000e+00> : vector<20x256xf32>
    %15 = tpu.matmul %12, %14, %cst_12 {dimension_numbers = #tpu.dot_dimension_numbers<[1], [0], [0], [1], [0, 0, 1, 1], [], []>} : vector<20x128xbf16>, vector<128x256xbf16>, vector<20x256xf32> -> vector<20x256xf32>
    %16 = arith.addf %11, %15 : vector<20x256xf32>
    %17 = vector.extract_strided_slice %10 {offsets = [1, 0], sizes = [20, 128], strides = [1, 1]} : vector<24x128xbf16> to vector<20x128xbf16>
    %c1 = arith.constant 1 : index
    %c0_13 = arith.constant 0 : index
    %c0_14 = arith.constant 0 : index
    %18 = vector.load %arg5[%c1, %c0_13, %c0_14] : memref<5x128x256xbf16, #tpu.memory_space<vmem>>, vector<1x128x256xbf16>
    %19 = vector.shape_cast %18 : vector<1x128x256xbf16> to vector<128x256xbf16>
    %cst_15 = arith.constant dense<0.000000e+00> : vector<20x256xf32>
    %20 = tpu.matmul %17, %19, %cst_15 {dimension_numbers = #tpu.dot_dimension_numbers<[1], [0], [0], [1], [0, 0, 1, 1], [], []>} : vector<20x128xbf16>, vector<128x256xbf16>, vector<20x256xf32> -> vector<20x256xf32>
    %21 = arith.addf %16, %20 : vector<20x256xf32>
    %22 = vector.extract_strided_slice %10 {offsets = [2, 0], sizes = [20, 128], strides = [1, 1]} : vector<24x128xbf16> to vector<20x128xbf16>
    %c2 = arith.constant 2 : index
    %c0_16 = arith.constant 0 : index
    %c0_17 = arith.constant 0 : index
    %23 = vector.load %arg5[%c2, %c0_16, %c0_17] : memref<5x128x256xbf16, #tpu.memory_space<vmem>>, vector<1x128x256xbf16>
    %24 = vector.shape_cast %23 : vector<1x128x256xbf16> to vector<128x256xbf16>
    %cst_18 = arith.constant dense<0.000000e+00> : vector<20x256xf32>
    %25 = tpu.matmul %22, %24, %cst_18 {dimension_numbers = #tpu.dot_dimension_numbers<[1], [0], [0], [1], [0, 0, 1, 1], [], []>} : vector<20x128xbf16>, vector<128x256xbf16>, vector<20x256xf32> -> vector<20x256xf32>
    %26 = arith.addf %21, %25 : vector<20x256xf32>
    %27 = vector.extract_strided_slice %10 {offsets = [3, 0], sizes = [20, 128], strides = [1, 1]} : vector<24x128xbf16> to vector<20x128xbf16>
    %c3 = arith.constant 3 : index
    %c0_19 = arith.constant 0 : index
    %c0_20 = arith.constant 0 : index
    %28 = vector.load %arg5[%c3, %c0_19, %c0_20] : memref<5x128x256xbf16, #tpu.memory_space<vmem>>, vector<1x128x256xbf16>
    %29 = vector.shape_cast %28 : vector<1x128x256xbf16> to vector<128x256xbf16>
    %cst_21 = arith.constant dense<0.000000e+00> : vector<20x256xf32>
    %30 = tpu.matmul %27, %29, %cst_21 {dimension_numbers = #tpu.dot_dimension_numbers<[1], [0], [0], [1], [0, 0, 1, 1], [], []>} : vector<20x128xbf16>, vector<128x256xbf16>, vector<20x256xf32> -> vector<20x256xf32>
    %31 = arith.addf %26, %30 : vector<20x256xf32>
    %32 = vector.extract_strided_slice %10 {offsets = [4, 0], sizes = [20, 128], strides = [1, 1]} : vector<24x128xbf16> to vector<20x128xbf16>
    %c4 = arith.constant 4 : index
    %c0_22 = arith.constant 0 : index
    %c0_23 = arith.constant 0 : index
    %33 = vector.load %arg5[%c4, %c0_22, %c0_23] : memref<5x128x256xbf16, #tpu.memory_space<vmem>>, vector<1x128x256xbf16>
    %34 = vector.shape_cast %33 : vector<1x128x256xbf16> to vector<128x256xbf16>
    %cst_24 = arith.constant dense<0.000000e+00> : vector<20x256xf32>
    %35 = tpu.matmul %32, %34, %cst_24 {dimension_numbers = #tpu.dot_dimension_numbers<[1], [0], [0], [1], [0, 0, 1, 1], [], []>} : vector<20x128xbf16>, vector<128x256xbf16>, vector<20x256xf32> -> vector<20x256xf32>
    %36 = arith.addf %31, %35 : vector<20x256xf32>
    %c0_25 = arith.constant 0 : index
    %c0_26 = arith.constant 0 : index
    %37 = vector.load %arg6[%c0_25, %c0_26] : memref<1x256xf32, #tpu.memory_space<vmem>>, vector<1x256xf32>
    %38 = vector.broadcast %37 : vector<1x256xf32> to vector<20x256xf32>
    %39 = arith.addf %36, %38 : vector<20x256xf32>
    %cst_27 = arith.constant 0.000000e+00 : f32
    %40 = vector.broadcast %cst_27 : f32 to vector<20x256xf32>
    %41 = arith.maximumf %39, %40 : vector<20x256xf32>
    %42 = tpu.iota {dimensions = array<i32: 0>} : vector<20x1xi32>
    %c2_i32 = arith.constant 2 : i32
    %43 = arith.subi %0, %c2_i32 : i32
    %44 = vector.broadcast %43 : i32 to vector<20x1xi32>
    %45 = arith.addi %42, %44 : vector<20x1xi32>
    %46 = vector.extract_strided_slice %41 {offsets = [2, 0], sizes = [1, 256], strides = [1, 1]} : vector<20x256xf32> to vector<1x256xf32>
    %c15_i32 = arith.constant 15 : i32
    %47 = vector.broadcast %c15_i32 : i32 to vector<20x1xi32>
    %48 = arith.cmpi eq, %45, %47 : vector<20x1xi32>
    %49 = arith.extui %48 : vector<20x1xi1> to vector<20x1xi32>
    %50 = arith.sitofp %49 : vector<20x1xi32> to vector<20x1xf32>
    %51 = vector.broadcast %50 : vector<20x1xf32> to vector<20x256xf32>
    %52 = arith.mulf %51, %41 : vector<20x256xf32>
    %cst_28 = arith.constant dense<0.000000e+00> : vector<256xf32>
    %53 = vector.multi_reduction <add>, %52, %cst_28 [0] : vector<20x256xf32> to vector<256xf32>
    %54 = vector.shape_cast %53 : vector<256xf32> to vector<1x256xf32>
    %c0_i32 = arith.constant 0 : i32
    %55 = vector.broadcast %c0_i32 : i32 to vector<20x1xi32>
    %56 = arith.cmpi slt, %45, %55 : vector<20x1xi32>
    %57 = vector.shape_cast %56 : vector<20x1xi1> to vector<20x1xi1>
    %58 = vector.broadcast %57 : vector<20x1xi1> to vector<20x256xi1>
    %59 = vector.shape_cast %46 : vector<1x256xf32> to vector<1x256xf32>
    %60 = vector.broadcast %59 : vector<1x256xf32> to vector<20x256xf32>
    %61 = arith.select %58, %60, %41 : vector<20x256xi1>, vector<20x256xf32>
    %c15_i32_29 = arith.constant 15 : i32
    %62 = vector.broadcast %c15_i32_29 : i32 to vector<20x1xi32>
    %63 = arith.cmpi sgt, %45, %62 : vector<20x1xi32>
    %64 = vector.shape_cast %63 : vector<20x1xi1> to vector<20x1xi1>
    %65 = vector.broadcast %64 : vector<20x1xi1> to vector<20x256xi1>
    %66 = vector.shape_cast %54 : vector<1x256xf32> to vector<1x256xf32>
    %67 = vector.broadcast %66 : vector<1x256xf32> to vector<20x256xf32>
    %68 = arith.select %65, %67, %61 : vector<20x256xi1>, vector<20x256xf32>
    %69 = arith.truncf %68 : vector<20x256xf32> to vector<20x256xbf16>
    %cst_30 = arith.constant 0.000000e+00 : f32
    %70 = vector.broadcast %cst_30 : f32 to vector<18x128xf32>
    %71 = vector.extract_strided_slice %69 {offsets = [0, 0], sizes = [18, 256], strides = [1, 1]} : vector<20x256xbf16> to vector<18x256xbf16>
    %c0_31 = arith.constant 0 : index
    %c0_32 = arith.constant 0 : index
    %c0_33 = arith.constant 0 : index
    %72 = vector.load %arg7[%c0_31, %c0_32, %c0_33] : memref<3x256x128xbf16, #tpu.memory_space<vmem>>, vector<1x256x128xbf16>
    %73 = vector.shape_cast %72 : vector<1x256x128xbf16> to vector<256x128xbf16>
    %cst_34 = arith.constant dense<0.000000e+00> : vector<18x128xf32>
    %74 = tpu.matmul %71, %73, %cst_34 {dimension_numbers = #tpu.dot_dimension_numbers<[1], [0], [0], [1], [0, 0, 1, 1], [], []>} : vector<18x256xbf16>, vector<256x128xbf16>, vector<18x128xf32> -> vector<18x128xf32>
    %75 = arith.addf %70, %74 : vector<18x128xf32>
    %76 = vector.extract_strided_slice %69 {offsets = [1, 0], sizes = [18, 256], strides = [1, 1]} : vector<20x256xbf16> to vector<18x256xbf16>
    %c1_35 = arith.constant 1 : index
    %c0_36 = arith.constant 0 : index
    %c0_37 = arith.constant 0 : index
    %77 = vector.load %arg7[%c1_35, %c0_36, %c0_37] : memref<3x256x128xbf16, #tpu.memory_space<vmem>>, vector<1x256x128xbf16>
    %78 = vector.shape_cast %77 : vector<1x256x128xbf16> to vector<256x128xbf16>
    %cst_38 = arith.constant dense<0.000000e+00> : vector<18x128xf32>
    %79 = tpu.matmul %76, %78, %cst_38 {dimension_numbers = #tpu.dot_dimension_numbers<[1], [0], [0], [1], [0, 0, 1, 1], [], []>} : vector<18x256xbf16>, vector<256x128xbf16>, vector<18x128xf32> -> vector<18x128xf32>
    %80 = arith.addf %75, %79 : vector<18x128xf32>
    %81 = vector.extract_strided_slice %69 {offsets = [2, 0], sizes = [18, 256], strides = [1, 1]} : vector<20x256xbf16> to vector<18x256xbf16>
    %c2_39 = arith.constant 2 : index
    %c0_40 = arith.constant 0 : index
    %c0_41 = arith.constant 0 : index
    %82 = vector.load %arg7[%c2_39, %c0_40, %c0_41] : memref<3x256x128xbf16, #tpu.memory_space<vmem>>, vector<1x256x128xbf16>
    %83 = vector.shape_cast %82 : vector<1x256x128xbf16> to vector<256x128xbf16>
    %cst_42 = arith.constant dense<0.000000e+00> : vector<18x128xf32>
    %84 = tpu.matmul %81, %83, %cst_42 {dimension_numbers = #tpu.dot_dimension_numbers<[1], [0], [0], [1], [0, 0, 1, 1], [], []>} : vector<18x256xbf16>, vector<256x128xbf16>, vector<18x128xf32> -> vector<18x128xf32>
    %85 = arith.addf %80, %84 : vector<18x128xf32>
    %c0_43 = arith.constant 0 : index
    %c0_44 = arith.constant 0 : index
    %86 = vector.load %arg8[%c0_43, %c0_44] : memref<1x128xf32, #tpu.memory_space<vmem>>, vector<1x128xf32>
    %87 = vector.broadcast %86 : vector<1x128xf32> to vector<18x128xf32>
    %88 = arith.addf %85, %87 : vector<18x128xf32>
    %cst_45 = arith.constant 0.000000e+00 : f32
    %89 = vector.broadcast %cst_45 : f32 to vector<18x128xf32>
    %90 = arith.maximumf %88, %89 : vector<18x128xf32>
    %91 = tpu.iota {dimensions = array<i32: 0>} : vector<18x1xi32>
    %c1_i32 = arith.constant 1 : i32
    %92 = arith.subi %0, %c1_i32 : i32
    %93 = vector.broadcast %92 : i32 to vector<18x1xi32>
    %94 = arith.addi %91, %93 : vector<18x1xi32>
    %95 = vector.extract_strided_slice %90 {offsets = [1, 0], sizes = [1, 128], strides = [1, 1]} : vector<18x128xf32> to vector<1x128xf32>
    %c15_i32_46 = arith.constant 15 : i32
    %96 = vector.broadcast %c15_i32_46 : i32 to vector<18x1xi32>
    %97 = arith.cmpi eq, %94, %96 : vector<18x1xi32>
    %98 = arith.extui %97 : vector<18x1xi1> to vector<18x1xi32>
    %99 = arith.sitofp %98 : vector<18x1xi32> to vector<18x1xf32>
    %100 = vector.broadcast %99 : vector<18x1xf32> to vector<18x128xf32>
    %101 = arith.mulf %100, %90 : vector<18x128xf32>
    %cst_47 = arith.constant dense<0.000000e+00> : vector<128xf32>
    %102 = vector.multi_reduction <add>, %101, %cst_47 [0] : vector<18x128xf32> to vector<128xf32>
    %103 = vector.shape_cast %102 : vector<128xf32> to vector<1x128xf32>
    %c0_i32_48 = arith.constant 0 : i32
    %104 = vector.broadcast %c0_i32_48 : i32 to vector<18x1xi32>
    %105 = arith.cmpi slt, %94, %104 : vector<18x1xi32>
    %106 = vector.shape_cast %105 : vector<18x1xi1> to vector<18x1xi1>
    %107 = vector.broadcast %106 : vector<18x1xi1> to vector<18x128xi1>
    %108 = vector.shape_cast %95 : vector<1x128xf32> to vector<1x128xf32>
    %109 = vector.broadcast %108 : vector<1x128xf32> to vector<18x128xf32>
    %110 = arith.select %107, %109, %90 : vector<18x128xi1>, vector<18x128xf32>
    %c15_i32_49 = arith.constant 15 : i32
    %111 = vector.broadcast %c15_i32_49 : i32 to vector<18x1xi32>
    %112 = arith.cmpi sgt, %94, %111 : vector<18x1xi32>
    %113 = vector.shape_cast %112 : vector<18x1xi1> to vector<18x1xi1>
    %114 = vector.broadcast %113 : vector<18x1xi1> to vector<18x128xi1>
    %115 = vector.shape_cast %103 : vector<1x128xf32> to vector<1x128xf32>
    %116 = vector.broadcast %115 : vector<1x128xf32> to vector<18x128xf32>
    %117 = arith.select %114, %116, %110 : vector<18x128xi1>, vector<18x128xf32>
    %118 = arith.truncf %117 : vector<18x128xf32> to vector<18x128xbf16>
    %cst_50 = arith.constant 0.000000e+00 : f32
    %119 = vector.broadcast %cst_50 : f32 to vector<16x4xf32>
    %120 = vector.extract_strided_slice %118 {offsets = [0, 0], sizes = [16, 128], strides = [1, 1]} : vector<18x128xbf16> to vector<16x128xbf16>
    %c0_51 = arith.constant 0 : index
    %c0_52 = arith.constant 0 : index
    %c0_53 = arith.constant 0 : index
    %121 = vector.load %arg9[%c0_51, %c0_52, %c0_53] : memref<3x128x4xbf16, #tpu.memory_space<vmem>>, vector<1x128x4xbf16>
    %122 = vector.shape_cast %121 : vector<1x128x4xbf16> to vector<128x4xbf16>
    %cst_54 = arith.constant dense<0.000000e+00> : vector<16x4xf32>
    %123 = tpu.matmul %120, %122, %cst_54 {dimension_numbers = #tpu.dot_dimension_numbers<[1], [0], [0], [1], [0, 0, 1, 1], [], []>} : vector<16x128xbf16>, vector<128x4xbf16>, vector<16x4xf32> -> vector<16x4xf32>
    %124 = arith.addf %119, %123 : vector<16x4xf32>
    %125 = vector.extract_strided_slice %118 {offsets = [1, 0], sizes = [16, 128], strides = [1, 1]} : vector<18x128xbf16> to vector<16x128xbf16>
    %c1_55 = arith.constant 1 : index
    %c0_56 = arith.constant 0 : index
    %c0_57 = arith.constant 0 : index
    %126 = vector.load %arg9[%c1_55, %c0_56, %c0_57] : memref<3x128x4xbf16, #tpu.memory_space<vmem>>, vector<1x128x4xbf16>
    %127 = vector.shape_cast %126 : vector<1x128x4xbf16> to vector<128x4xbf16>
    %cst_58 = arith.constant dense<0.000000e+00> : vector<16x4xf32>
    %128 = tpu.matmul %125, %127, %cst_58 {dimension_numbers = #tpu.dot_dimension_numbers<[1], [0], [0], [1], [0, 0, 1, 1], [], []>} : vector<16x128xbf16>, vector<128x4xbf16>, vector<16x4xf32> -> vector<16x4xf32>
    %129 = arith.addf %124, %128 : vector<16x4xf32>
    %130 = vector.extract_strided_slice %118 {offsets = [2, 0], sizes = [16, 128], strides = [1, 1]} : vector<18x128xbf16> to vector<16x128xbf16>
    %c2_59 = arith.constant 2 : index
    %c0_60 = arith.constant 0 : index
    %c0_61 = arith.constant 0 : index
    %131 = vector.load %arg9[%c2_59, %c0_60, %c0_61] : memref<3x128x4xbf16, #tpu.memory_space<vmem>>, vector<1x128x4xbf16>
    %132 = vector.shape_cast %131 : vector<1x128x4xbf16> to vector<128x4xbf16>
    %cst_62 = arith.constant dense<0.000000e+00> : vector<16x4xf32>
    %133 = tpu.matmul %130, %132, %cst_62 {dimension_numbers = #tpu.dot_dimension_numbers<[1], [0], [0], [1], [0, 0, 1, 1], [], []>} : vector<16x128xbf16>, vector<128x4xbf16>, vector<16x4xf32> -> vector<16x4xf32>
    %134 = arith.addf %129, %133 : vector<16x4xf32>
    %c0_63 = arith.constant 0 : index
    %c0_64 = arith.constant 0 : index
    %135 = vector.load %arg10[%c0_63, %c0_64] : memref<1x4xf32, #tpu.memory_space<vmem>>, vector<1x4xf32>
    %136 = vector.broadcast %135 : vector<1x4xf32> to vector<16x4xf32>
    %137 = arith.addf %134, %136 : vector<16x4xf32>
    %c0_65 = arith.constant 0 : index
    %c0_66 = arith.constant 0 : index
    %c0_67 = arith.constant 0 : index
    %c0_68 = arith.constant 0 : index
    %138 = vector.load %arg11[%c0_65, %c0_66, %c0_67, %c0_68] : memref<1x1x16x4xf32, #tpu.memory_space<vmem>>, vector<1x1x16x4xf32>
    %139 = vector.shape_cast %138 : vector<1x1x16x4xf32> to vector<16x4xf32>
    %140 = vector.shape_cast %137 : vector<16x4xf32> to vector<1x1x16x4xf32>
    tpu.vector_store %arg11[%c0_65, %c0_66, %c0_67, %c0_68], %140 {strides = array<i32>} : memref<1x1x16x4xf32, #tpu.memory_space<vmem>>, vector<1x1x16x4xf32>,
    return
  }
  func.func @transform_0(%arg0: i32, %arg1: i32) -> (i32, i32, i32, i32) {
    %c0_i32 = arith.constant 0 : i32
    %c0_i32_0 = arith.constant 0 : i32
    %c0_i32_1 = arith.constant 0 : i32
    return %arg0, %arg1, %c0_i32, %c0_i32_0 : i32, i32, i32, i32
  }
  func.func @transform_1(%arg0: i32, %arg1: i32) -> (i32, i32) {
    %c0_i32 = arith.constant 0 : i32
    %c0_i32_0 = arith.constant 0 : i32
    %c0_i32_1 = arith.constant 0 : i32
    return %c0_i32, %c0_i32_0 : i32, i32
  }
  func.func @transform_2(%arg0: i32, %arg1: i32) -> (i32, i32) {
    %c0_i32 = arith.constant 0 : i32
    %c0_i32_0 = arith.constant 0 : i32
    %c0_i32_1 = arith.constant 0 : i32
    return %c0_i32, %c0_i32_0 : i32, i32
  }
  func.func @transform_3(%arg0: i32, %arg1: i32) -> (i32, i32, i32) {
    %c0_i32 = arith.constant 0 : i32
    %c0_i32_0 = arith.constant 0 : i32
    %c0_i32_1 = arith.constant 0 : i32
    %c0_i32_2 = arith.constant 0 : i32
    return %c0_i32, %c0_i32_0, %c0_i32_1 : i32, i32, i32
  }
  func.func @transform_4(%arg0: i32, %arg1: i32) -> (i32, i32) {
    %c0_i32 = arith.constant 0 : i32
    %c0_i32_0 = arith.constant 0 : i32
    %c0_i32_1 = arith.constant 0 : i32
    return %c0_i32, %c0_i32_0 : i32, i32
  }
  func.func @transform_5(%arg0: i32, %arg1: i32) -> (i32, i32, i32) {
    %c0_i32 = arith.constant 0 : i32
    %c0_i32_0 = arith.constant 0 : i32
    %c0_i32_1 = arith.constant 0 : i32
    %c0_i32_2 = arith.constant 0 : i32
    return %c0_i32, %c0_i32_0, %c0_i32_1 : i32, i32, i32
  }
  func.func @transform_6(%arg0: i32, %arg1: i32) -> (i32, i32) {
    %c0_i32 = arith.constant 0 : i32
    %c0_i32_0 = arith.constant 0 : i32
    %c0_i32_1 = arith.constant 0 : i32
    return %c0_i32, %c0_i32_0 : i32, i32
  }
  func.func @transform_7(%arg0: i32, %arg1: i32) -> (i32, i32, i32) {
    %c0_i32 = arith.constant 0 : i32
    %c0_i32_0 = arith.constant 0 : i32
    %c0_i32_1 = arith.constant 0 : i32
    %c0_i32_2 = arith.constant 0 : i32
    return %c0_i32, %c0_i32_0, %c0_i32_1 : i32, i32, i32
  }
  func.func @transform_8(%arg0: i32, %arg1: i32) -> (i32, i32) {
    %c0_i32 = arith.constant 0 : i32
    %c0_i32_0 = arith.constant 0 : i32
    %c0_i32_1 = arith.constant 0 : i32
    return %c0_i32, %c0_i32_0 : i32, i32
  }
  func.func @transform_9(%arg0: i32, %arg1: i32) -> (i32, i32, i32, i32) {
    %c0_i32 = arith.constant 0 : i32
    %c0_i32_0 = arith.constant 0 : i32
    %c0_i32_1 = arith.constant 0 : i32
    return %arg0, %arg1, %c0_i32, %c0_i32_0 : i32, i32, i32, i32
  }
}

</mosaic_0001>

<bundles_post_ra>
// kernel: autoencoder_forward.1
= control target key start
LH: loop header
LB: loop body
LE: loop exit
PB: predicated region body
PF: predicated region fallthrough
CT: control target
= control target key end

     0   :  { %s3288_s30 = smov 0   ;;  %s3290_s10 = smov 0   ;;  %s3901_s0 = inlined_call_operand.vmem [shape: bf16[2,1,24,28], index: 0, kind: input, shape index: {}]   ;;  %s3902_s1 = inlined_call_operand.vmem [shape: bf16[28,128], index: 1, kind: input, shape index: {}]   ;;  %s3903_s2 = inlined_call_operand.vmem [shape: f32[1,128], index: 2, kind: input, shape index: {}]   ;;  %s3904_s3 = inlined_call_operand.vmem [shape: bf16[5,128,256], index: 3, kind: input, shape index: {}]   ;;  %s3905_s4 = inlined_call_operand.vmem [shape: f32[1,256], index: 4, kind: input, shape index: {}]   ;;  %s3906_s5 = inlined_call_operand.vmem [shape: bf16[3,256,128], index: 5, kind: input, shape index: {}]   ;;  %s3907_s6 = inlined_call_operand.vmem [shape: f32[1,128], index: 6, kind: input, shape index: {}]   ;;  %s3908_s7 = inlined_call_operand.vmem [shape: bf16[3,128,4], index: 7, kind: input, shape index: {}]   ;;  %s3909_s8 = inlined_call_operand.vmem [shape: f32[1,4], index: 8, kind: input, shape index: {}]   ;;  %s3910_s9 = inlined_call_operand.vmem [shape: f32[2,1,16,4], index: 9, kind: output, shape index: {}]  }
   0x1   :  { %s3292_s11 = smov 0  }
   0x2 LB: > { %s31_s12 = sadd.s32 1, %s3229_s10  ;;  %p2473_p0 = scmp.ge.s32.totalorder %s3233_s11, 1  ;;  %s3233_s11 = sphi %s3292_s11, %s19_s11   ;;  %s3229_s10 = sphi %s3290_s10, %s3912_s10   ;;  %s3225_s30 = sphi %s3288_s30, %s3911_s30  }
   0x3   : > { %p33_p1 = scmp.ge.s32.totalorder %s31_s12, 2  ;;  %p307_p2 = scmp.lt.s32.totalorder %s3233_s11, 3 }
   0x5   : > { %s3914_s12 = smov (%p33_p1, %s31_s12), 0  ;;  %p308_p3 = pnand %p2473_p0, %p307_p2 }
   0x6   : > { %p351_p4 = scmp.lt.s32.totalorder (!%p308_p3), %s3225_s30, 1 }
   0x7   : > { %311 = sbr.rel (%p308_p3) target bundleno = 1034 (0x40a), region = 56 }
   0xc   : > { %v3015_v0 = vld [vmem:[%s3902_s1 + $0x8] sm:$0x3f]   ;;  %vm411_vm0 = vcmask 1045504   ;;  %v3016_v1 = vld [vmem:[%s3902_s1] sm:$0xff]   ;;  %s3916_s30 = smov (!%p351_p4, %s3225_s30), 1  ;;  %vm404_vm1 = vcmask 228352  }
   0xd   : > { %2986 = vmatprep.subr.msk.bf16.mxu0 %vm411_vm0, %v3015_v0  ;;  %v413_v2 = vsel %vm411_vm0, %v3015_v0, 0  ;;  %v3021_v3 = vld [vmem:[%s3904_s3 + $0x74] ss:$8 sps:$4 sm:$0xff]   ;;  %v3027_v5 = vld [vmem:[%s3904_s3 + $0xf0] ss:$8 sps:$4 sm:$0xff]   ;;  %s2987_s23 = smul.u32 12, %s3916_s30 }
   0xe   : > { %2919 = vmatpush3.bf16.msra.mxu0 %v413_v2  ;;  %v3025_v4 = vld [vmem:[%s3904_s3 + $0xf4] ss:$8 sps:$4 sm:$0xff]   ;;  %v3019_v6 = vld [vmem:[%s3904_s3 + $0x70] ss:$8 sps:$4 sm:$0xff]   ;;  %v3031_v7 = vld [vmem:[%s3904_s3 + $0xe4] ss:$8 sps:$4 sm:$0xff]  }
   0xf   : > { %2920 = vmatprep.subr.bf16.mxu0 %v3016_v1  ;;  %599 = vmatprep.subr.bf16.mxu1 %v3025_v4  ;;  %s359_s26 = scalar_lea.vmem %s3901_s0, %s2987_s23  ;;  %v3033_v8 = vld [vmem:[%s3904_s3 + $0xe0] ss:$8 sps:$4 sm:$0xff]   ;;  %v3024_v11 = vld [vmem:[%s3904_s3 + $0x64] ss:$8 sps:$4 sm:$0xff]   ;;  %v3037_v12 = vld [vmem:[%s3904_s3 + $0xd4] ss:$8 sps:$4 sm:$0xff]  }
  0x10   : > { %600 = vmatpush1.bf16.msra.mxu1 %v3027_v5  ;;  %v3017_v9 = vld [vmem:[%s359_s26] sm:$0xff]   ;;  %v3018_v10 = vld [vmem:[%s359_s26 + $0x8] ss:$0 sps:$4 sm:$0xff]   ;;  %v3039_v13 = vld [vmem:[%s3904_s3 + $0xd0] ss:$8 sps:$4 sm:$0xff]   ;;  %v3235_v36 = vmov 0  }
  0x11   : > { %601 = vmatprep.subr.bf16.mxu1 %v3031_v7  ;;  %2922 = vmatprep.mubr.msk.bf16.mxu0 %vm404_vm1, %v3017_v9  ;;  %v3022_v14 = vld [vmem:[%s3904_s3 + $0x60] ss:$8 sps:$4 sm:$0xff]   ;;  %v3030_v15 = vld [vmem:[%s3904_s3 + $0x54] ss:$8 sps:$4 sm:$0xff]   ;;  %v3043_v16 = vld [vmem:[%s3904_s3 + $0xc4] ss:$8 sps:$4 sm:$0xff]  }
  0x12   : > { %2921 = vmatpush3.bf16.msra.mxu0 %v3016_v1  ;;  %v3028_v17 = vld [vmem:[%s3904_s3 + $0x50] ss:$8 sps:$4 sm:$0xff]   ;;  %v3036_v18 = vld [vmem:[%s3904_s3 + $0x44] ss:$8 sps:$4 sm:$0xff]   ;;  %v3034_v19 = vld [vmem:[%s3904_s3 + $0x40] ss:$8 sps:$4 sm:$0xff]   ;;  %631 = vmatprep.mubr.bf16.mxu1 %v3235_v36 }
  0x13   : > { %730 = vmatprep.subr.bf16.mxu0 %v3021_v3  ;;  %v3042_v20 = vld [vmem:[%s3904_s3 + $0x34] ss:$8 sps:$4 sm:$0xff]   ;;  %v3040_v21 = vld [vmem:[%s3904_s3 + $0x30] ss:$8 sps:$4 sm:$0xff]   ;;  %v3045_v22 = vld [vmem:[%s3904_s3 + $0xc0] ss:$8 sps:$4 sm:$0xff]  }
  0x14   : > { %602 = vmatpush1.bf16.msra.mxu1 %v3033_v8  ;;  %v3048_v23 = vld [vmem:[%s3904_s3 + $0x24] ss:$8 sps:$4 sm:$0xff]   ;;  %v3046_v24 = vld [vmem:[%s3904_s3 + $0x20] ss:$8 sps:$4 sm:$0xff]   ;;  %v3049_v25 = vld [vmem:[%s3904_s3 + $0xb4] ss:$8 sps:$4 sm:$0xff]  }
  0x15   : > { %2923 = vmatmul.mubr.msk.bf16.vlgmr.msra.gmra.mxu0 %vm404_vm1, %v3018_v10  ;;  %603 = vmatprep.subr.bf16.mxu1 %v3037_v12  ;;  %v3051_v26 = vld [vmem:[%s3904_s3 + $0xb0] ss:$8 sps:$4 sm:$0xff]   ;;  %v3054_v27 = vld [vmem:[%s3904_s3 + $0x14] ss:$8 sps:$4 sm:$0xff]   ;;  %v3055_v29 = vld [vmem:[%s3904_s3 + $0xa4] ss:$8 sps:$4 sm:$0xff]  }
  0x16   : > { %731 = vmatpush1.bf16.msra.mxu0 %v3019_v6  ;;  %v3052_v28 = vld [vmem:[%s3904_s3 + $0x10] ss:$8 sps:$4 sm:$0xff]   ;;  %v3057_v30 = vld [vmem:[%s3904_s3 + $0xa0] ss:$8 sps:$4 sm:$0xff]   ;;  %v3060_v31 = vld [vmem:[%s3904_s3 + $0x4] ss:$8 sps:$4 sm:$0xff]   ;;  %762 = vmatprep.mubr.bf16.mxu0 %v3235_v36 }
  0x17   : > { %732 = vmatprep.subr.bf16.mxu0 %v3024_v11  ;;  %v3058_v32 = vld [vmem:[%s3904_s3] ss:$8 sps:$4 sm:$0xff]   ;;  %v3061_v33 = vld [vmem:[%s3904_s3 + $0x94] ss:$8 sps:$4 sm:$0xff]   ;;  %v3063_v34 = vld [vmem:[%s3904_s3 + $0x90] ss:$8 sps:$4 sm:$0xff]  }
  0x18   : > { %604 = vmatpush1.bf16.msra.mxu1 %v3039_v13  ;;  %v3066_v35 = vld [vmem:[%s3904_s3 + $0x1f4] ss:$8 sps:$4 sm:$0xff]   ;;  %v3067_v37 = vld [vmem:[%s3904_s3 + $0x84] ss:$8 sps:$4 sm:$0xff]   ;;  %v3069_v38 = vld [vmem:[%s3904_s3 + $0x80] ss:$8 sps:$4 sm:$0xff]  }
  0x19   : > { %605 = vmatprep.subr.bf16.mxu1 %v3043_v16  ;;  %v3075_v39 = vld [vmem:[%s3904_s3 + $0x174] ss:$8 sps:$4 sm:$0xff]   ;;  %v2477_v40 = vld [vmem:[%s3903_s2] ss:$0 sm:$0xff]  ;;  %v3064_v52 = vld [vmem:[%s3904_s3 + $0x1f0] ss:$8 sps:$4 sm:$0xff]  }
  0x1a   : > { %733 = vmatpush1.bf16.msra.mxu0 %v3022_v14  ;;  %v3072_v54 = vld [vmem:[%s3904_s3 + $0x1e4] ss:$8 sps:$4 sm:$0xff]   ;;  %v3070_v58 = vld [vmem:[%s3904_s3 + $0x1e0] ss:$8 sps:$4 sm:$0xff]   ;;  %v3078_v62 = vld [vmem:[%s3904_s3 + $0x1d4] ss:$8 sps:$4 sm:$0xff]  }
  0x1b   : > { %734 = vmatprep.subr.bf16.mxu0 %v3030_v15  ;;  %vm501_vm2 = vsmask.f32 7424  ;;  %v3073_v0 = vld [vmem:[%s3904_s3 + $0x170] ss:$8 sps:$4 sm:$0xff]   ;;  %v3081_v4 = vld [vmem:[%s3904_s3 + $0x164] ss:$8 sps:$4 sm:$0xff]  }
  0x1c   : > { %606 = vmatpush1.bf16.msra.mxu1 %v3045_v22  ;;  %v3076_v3 = vld [vmem:[%s3904_s3 + $0x1d0] ss:$8 sps:$4 sm:$0xff]   ;;  %v3084_v6 = vld [vmem:[%s3904_s3 + $0x1c4] ss:$8 sps:$4 sm:$0xff]   ;;  %v3079_v7 = vld [vmem:[%s3904_s3 + $0x160] ss:$8 sps:$4 sm:$0xff]  }
  0x1d   : > { %607 = vmatprep.subr.bf16.mxu1 %v3049_v25  ;;  %v3082_v8 = vld [vmem:[%s3904_s3 + $0x1c0] ss:$8 sps:$4 sm:$0xff]   ;;  %v3087_v9 = vld [vmem:[%s3904_s3 + $0x154] ss:$8 sps:$4 sm:$0xff]   ;;  %v3085_v12 = vld [vmem:[%s3904_s3 + $0x150] ss:$8 sps:$4 sm:$0xff]  }
  0x1e   : > { %735 = vmatpush1.bf16.msra.mxu0 %v3028_v17  ;;  %v3090_v10 = vld [vmem:[%s3904_s3 + $0x1b4] ss:$8 sps:$4 sm:$0xff]   ;;  %v3088_v14 = vld [vmem:[%s3904_s3 + $0x1b0] ss:$8 sps:$4 sm:$0xff]   ;;  %v3093_v15 = vld [vmem:[%s3904_s3 + $0x144] ss:$8 sps:$4 sm:$0xff]  }
  0x1f   : > { %736 = vmatprep.subr.bf16.mxu0 %v3036_v18  ;;  %v3096_v16 = vld [vmem:[%s3904_s3 + $0x1a4] ss:$8 sps:$4 sm:$0xff]   ;;  %v3091_v17 = vld [vmem:[%s3904_s3 + $0x140] ss:$8 sps:$4 sm:$0xff]   ;;  %v3100_v22 = vld [vmem:[%s3904_s3 + $0x190] ss:$8 sps:$4 sm:$0xff]  }
  0x20   : > { %608 = vmatpush1.bf16.msra.mxu1 %v3051_v26  ;;  %v3094_v18 = vld [vmem:[%s3904_s3 + $0x1a0] ss:$8 sps:$4 sm:$0xff]   ;;  %vm960_vm3 = vsmask.f32 6400  ;;  %vm800_vm4 = vcmask 1046528   ;;  %vm1316_vm7 = vcmask 1043456  }
  0x21   : > { %609 = vmatprep.subr.bf16.mxu1 %v3055_v29  ;;  %vm3237_vm9 = vmmov 0   ;;  %vm1988_vm12 = vcmask 1041408   ;;  %s2802_s25 = sshll.u32 %s3916_s30, 4  ;;  %vm2374_vm14 = vcmask 31744  }
  0x22   : > { %737 = vmatpush1.bf16.msra.mxu0 %v3034_v19  ;;  %v3099_v19 = vld [vmem:[%s3904_s3 + $0x134] ss:$8 sps:$4 sm:$0xff]   ;;  %s368_s13 = scalar_lea.vmem %s3910_s9, %s2802_s25 }
  0x23   : > { %738 = vmatprep.subr.bf16.mxu0 %v3042_v20  ;;  %v3102_v20 = vld [vmem:[%s3904_s3 + $0x194] ss:$8 sps:$4 sm:$0xff]  }
  0x24   : > { %610 = vmatpush1.bf16.msra.mxu1 %v3057_v30  ;;  %v3106_v30 = vld [vmem:[%s3904_s3 + $0x180] ss:$8 sps:$4 sm:$0xff]  }
  0x25   : > { %611 = vmatprep.subr.bf16.mxu1 %v3061_v33  ;;  %v3109_v33 = vld [vmem:[%s3904_s3 + $0x110] ss:$8 sps:$4 sm:$0xff]  }
  0x26   : > { %739 = vmatpush1.bf16.msra.mxu0 %v3040_v21  ;;  %v3097_v21 = vld [vmem:[%s3904_s3 + $0x130] ss:$8 sps:$4 sm:$0xff]  }
  0x27   : > { %740 = vmatprep.subr.bf16.mxu0 %v3048_v23  ;;  %v3105_v23 = vld [vmem:[%s3904_s3 + $0x124] ss:$8 sps:$4 sm:$0xff]  }
  0x28   : > { %612 = vmatpush1.bf16.msra.mxu1 %v3063_v34 }
  0x29   : > { %613 = vmatprep.subr.bf16.mxu1 %v3067_v37 }
  0x2a   : > { %741 = vmatpush1.bf16.msra.mxu0 %v3046_v24  ;;  %v3108_v24 = vld [vmem:[%s3904_s3 + $0x184] ss:$8 sps:$4 sm:$0xff]  }
  0x2b   : > { %742 = vmatprep.subr.bf16.mxu0 %v3054_v27  ;;  %v3103_v27 = vld [vmem:[%s3904_s3 + $0x120] ss:$8 sps:$4 sm:$0xff]  }
  0x2c   : > { %614 = vmatpush1.bf16.msra.mxu1 %v3069_v38  ;;  %v3112_v38 = vld [vmem:[%s3904_s3 + $0x100] ss:$8 sps:$4 sm:$0xff]  }
  0x2d   : > { %886 = vmatprep.subr.bf16.mxu1 %v3075_v39  ;;  %v3117_v39 = vld [vmem:[%s3904_s3 + $0x274] ss:$8 sps:$4 sm:$0xff]  }
  0x2e   : > { %743 = vmatpush1.bf16.msra.mxu0 %v3052_v28 }
  0x2f   : > { %744 = vmatprep.subr.bf16.mxu0 %v3060_v31  ;;  %v3111_v31 = vld [vmem:[%s3904_s3 + $0x114] ss:$8 sps:$4 sm:$0xff]  }
  0x32   : > { %745 = vmatpush1.bf16.msra.mxu0 %v3058_v32 }
  0x33   : > { %1050 = vmatprep.subr.bf16.mxu0 %v3066_v35  ;;  %v3114_v35 = vld [vmem:[%s3904_s3 + $0x104] ss:$8 sps:$4 sm:$0xff]  }
  0xd5   : > { %v2924_v41 = vpop.f32.mrf.mxu0 }
  0xd6   : > { %v458_v42 = vadd.f32 %v2924_v41, %v2477_v40 }
  0xd7   : > { %v449_v43 = vpop.f32.mrf.mxu0 }
  0xd8   : > { %v465_v45 = vmax.f32 %v458_v42, 0.0  ;;  %v450_v46 = vadd.f32 %v2477_v40, %v449_v43  ;;  %v3115_v42 = vld [vmem:[%s3904_s3 + $0x270] ss:$8 sps:$4 sm:$0xff]   ;;  %v3120_v43 = vld [vmem:[%s3904_s3 + $0x264] ss:$8 sps:$4 sm:$0xff]  }
  0xd9   : > { %v2925_v44 = vpop.f32.mrf.mxu0 }
  0xda   : > { %v3427_v49 = vpack.c.bf16 %v465_v45, %v465_v45  ;;  %v463_v50 = vmax.f32 %v450_v46, 0.0  ;;  %v3118_v45 = vld [vmem:[%s3904_s3 + $0x260] ss:$8 sps:$4 sm:$0xff]   ;;  %v3123_v46 = vld [vmem:[%s3904_s3 + $0x254] ss:$8 sps:$4 sm:$0xff]  }
  0xdb   : > { %v452_v47 = vpop.f32.mrf.mxu0 }
  0xdc   : > { %v453_v48 = vadd.f32 %v2477_v40, %v452_v47  ;;  %v510_v56 = vshll.u32 %v3427_v49, 16  ;;  %v1126_v59 = vrot.slane %v3427_v49, 2  ;;  %v514_v11 = vshrl.u32 %v3427_v49, 16  ;;  %v3121_v47 = vld [vmem:[%s3904_s3 + $0x250] ss:$8 sps:$4 sm:$0xff]  }
  0xdd   : > { %v802_v41 = vrot.slane %v3427_v49, 1 }
  0xde   : > { %v464_v51 = vmax.f32 %v453_v48, 0.0  ;;  %v512_v2 = vrot.slane %v510_v56, 1  ;;  %v965_v28 = vrot.slane %v510_v56, 2  ;;  %v964_v29 = vrot.slane %v514_v11, 1  ;;  %v3126_v48 = vld [vmem:[%s3904_s3 + $0x244] ss:$8 sps:$4 sm:$0xff]  }
  0xdf   : > { %v3133_v56 = vld [vmem:[%s3904_s3 + $0x210] ss:$8 sps:$4 sm:$0xff]  }
  0xe0   : > { %v3432_v53 = vpack.c.bf16 %v464_v51, %v463_v50  ;;  %v516_v13 = vor.u32 %v514_v11, %v512_v2  ;;  %v966_v34 = vor.u32 %v965_v28, %v964_v29  ;;  %v3124_v50 = vld [vmem:[%s3904_s3 + $0x240] ss:$8 sps:$4 sm:$0xff]   ;;  %v3129_v51 = vld [vmem:[%s3904_s3 + $0x234] ss:$8 sps:$4 sm:$0xff]  }
  0xe1   : > { %v3157_v11 = vld [vmem:[%s3906_s5 + $0xf0] sm:$0xff]  }
  0xe2   : > { %763 = vmatmul.mubr.bf16.vlgmr.msra.gmra.mxu0 %v3432_v53  ;;  %v505_v55 = vshll.u32 %v3432_v53, 16  ;;  %v1125_v57 = vrot.slane %v3432_v53, 2  ;;  %v503_v60 = vshrl.u32 %v3432_v53, 16  ;;  %v801_v40 = vrot.slane %v3432_v53, 1  ;;  %v3132_v53 = vld [vmem:[%s3904_s3 + $0x224] ss:$8 sps:$4 sm:$0xff]  }
  0xe3   : > { %1051 = vmatpush1.bf16.msra.mxu0 %v3064_v52  ;;  %772 = vmatprep.mubr.bf16.mxu0 %v3235_v36  ;;  %v3127_v52 = vld [vmem:[%s3904_s3 + $0x230] ss:$8 sps:$4 sm:$0xff]  }
  0xe4   : > { %1052 = vmatprep.subr.bf16.mxu0 %v3072_v54  ;;  %v507_v61 = vrot.slane %v505_v55, 1  ;;  %v3453_v63 = vsel %vm411_vm0, %v1125_v57, %v1126_v59  ;;  %v961_v25 = vrot.slane %v503_v60, 1  ;;  %v962_v26 = vrot.slane %v505_v55, 2  ;;  %v3130_v54 = vld [vmem:[%s3904_s3 + $0x220] ss:$8 sps:$4 sm:$0xff]  }
  0xe5   : > { %v803_v44 = vsel %vm800_vm4, %v801_v40, %v802_v41  ;;  %v3135_v55 = vld [vmem:[%s3904_s3 + $0x214] ss:$8 sps:$4 sm:$0xff]   ;;  %v3138_v57 = vld [vmem:[%s3904_s3 + $0x204] ss:$8 sps:$4 sm:$0xff]  }
  0xe6   : > { %v508_v1 = vor.u32 %v507_v61, %v503_v60  ;;  %v963_v32 = vor.u32 %v962_v26, %v961_v25  ;;  %v3139_v60 = vld [vmem:[%s3906_s5 + $0x78] sm:$0xff]   ;;  %v3170_v25 = vld [vmem:[%s3906_s5 + $0x80] sm:$0xff]  }
  0xe7   : > { %1053 = vmatpush1.bf16.msra.mxu0 %v3070_v58  ;;  %v3136_v58 = vld [vmem:[%s3904_s3 + $0x200] ss:$8 sps:$4 sm:$0xff]   ;;  %v3140_v61 = vld [vmem:[%s3906_s5 + $0x38] sm:$0xff]  }
  0xe8   : > { %v513_v5 = vsel %vm501_vm2, %v508_v1, %v512_v2  ;;  %1054 = vmatprep.subr.bf16.mxu0 %v3078_v62  ;;  %v967_v37 = vsel %vm960_vm3, %v963_v32, %v966_v34  ;;  %v3141_v62 = vld [vmem:[%s3906_s5 + $0x70] sm:$0xff]   ;;  %v3147_v1 = vld [vmem:[%s3906_s5 + $0x58] sm:$0xff]  }
  0xe9   : > { %632 = vmatmul.mubr.bf16.vlgmr.msra.gmra.mxu1 %v513_v5  ;;  %v3148_v2 = vld [vmem:[%s3906_s5 + $0x18] sm:$0xff]   ;;  %v3151_v5 = vld [vmem:[%s3906_s5 + $0x48] sm:$0xff]  }
  0xea   : > { %887 = vmatpush1.bf16.msra.mxu1 %v3073_v0  ;;  %773 = vmatmul.mubr.bf16.gmra.mxu0 %v3427_v49  ;;  %v3143_v49 = vld [vmem:[%s3906_s5 + $0x68] sm:$0xff]   ;;  %v3146_v0 = vld [vmem:[%s3906_s5 + $0x20] sm:$0xff]   ;;  %v3171_v26 = vld [vmem:[%s3906_s5 + $0x178] sm:$0xff]  }
  0xeb   : > { %1055 = vmatpush1.bf16.msra.mxu0 %v3076_v3  ;;  %888 = vmatprep.subr.bf16.mxu1 %v3081_v4  ;;  %v3149_v3 = vld [vmem:[%s3906_s5 + $0x50] sm:$0xff]  }
  0xec   : > { %1056 = vmatprep.subr.bf16.mxu0 %v3084_v6  ;;  %641 = vmatprep.mubr.bf16.mxu1 %v3235_v36  ;;  %v3150_v4 = vld [vmem:[%s3906_s5 + $0x10] sm:$0xff]   ;;  %v3152_v6 = vld [vmem:[%s3906_s5 + $0x8] sm:$0xff]  }
  0xed   : > { %1082 = vmatprep.mubr.bf16.mxu0 %v3235_v36 }
  0xee   : > { %889 = vmatpush1.bf16.msra.mxu1 %v3079_v7  ;;  %v3153_v7 = vld [vmem:[%s3906_s5 + $0xf8] sm:$0xff]  }
  0xef   : > { %1057 = vmatpush1.bf16.msra.mxu0 %v3082_v8  ;;  %890 = vmatprep.subr.bf16.mxu1 %v3087_v9  ;;  %v3154_v8 = vld [vmem:[%s3906_s5 + $0xb8] sm:$0xff]   ;;  %v3155_v9 = vld [vmem:[%s3906_s5 + $0x40] sm:$0xff]  }
  0xf0   : > { %1058 = vmatprep.subr.bf16.mxu0 %v3090_v10  ;;  %v3156_v10 = vld [vmem:[%s3906_s5] sm:$0xff]  }
  0xf1   : > { %642 = vmatmul.mubr.bf16.gmra.mxu1 %v516_v13  ;;  %v3236_v13 = vmov 0.0  }
  0xf2   : > { %891 = vmatpush1.bf16.msra.mxu1 %v3085_v12  ;;  %918 = vmatprep.mubr.bf16.mxu1 %v3235_v36  ;;  %v3158_v12 = vld [vmem:[%s3906_s5 + $0xb0] sm:$0xff]  }
  0xf3   : > { %1059 = vmatpush1.bf16.msra.mxu0 %v3088_v14  ;;  %892 = vmatprep.subr.bf16.mxu1 %v3093_v15  ;;  %v3159_v14 = vld [vmem:[%s3906_s5 + $0xe8] sm:$0xff]  }
  0xf4   : > { %1060 = vmatprep.subr.bf16.mxu0 %v3096_v16  ;;  %v3160_v15 = vld [vmem:[%s3906_s5 + $0xa8] sm:$0xff]   ;;  %v3161_v16 = vld [vmem:[%s3906_s5 + $0xe0] sm:$0xff]  }
  0xf6   : > { %893 = vmatpush1.bf16.msra.mxu1 %v3091_v17  ;;  %v3162_v17 = vld [vmem:[%s3906_s5 + $0xa0] sm:$0xff]  }
  0xf7   : > { %1061 = vmatpush1.bf16.msra.mxu0 %v3094_v18  ;;  %894 = vmatprep.subr.bf16.mxu1 %v3099_v19  ;;  %v3163_v18 = vld [vmem:[%s3906_s5 + $0xd8] sm:$0xff]  }
  0xf8   : > { %1062 = vmatprep.subr.bf16.mxu0 %v3102_v20  ;;  %v3164_v19 = vld [vmem:[%s3906_s5 + $0x98] sm:$0xff]   ;;  %v3165_v20 = vld [vmem:[%s3906_s5 + $0xd0] sm:$0xff]  }
  0xfa   : > { %895 = vmatpush1.bf16.msra.mxu1 %v3097_v21  ;;  %v3166_v21 = vld [vmem:[%s3906_s5 + $0x90] sm:$0xff]  }
  0xfb   : > { %1063 = vmatpush1.bf16.msra.mxu0 %v3100_v22  ;;  %896 = vmatprep.subr.bf16.mxu1 %v3105_v23  ;;  %v3167_v22 = vld [vmem:[%s3906_s5 + $0xc8] sm:$0xff]  }
  0xfc   : > { %1064 = vmatprep.subr.bf16.mxu0 %v3108_v24  ;;  %v3168_v23 = vld [vmem:[%s3906_s5 + $0x88] sm:$0xff]   ;;  %v3169_v24 = vld [vmem:[%s3906_s5 + $0xc0] sm:$0xff]  }
  0xfe   : > { %897 = vmatpush1.bf16.msra.mxu1 %v3103_v27 }
  0xff   : > { %1065 = vmatpush1.bf16.msra.mxu0 %v3106_v30  ;;  %898 = vmatprep.subr.bf16.mxu1 %v3111_v31 }
 0x100   : > { %2807 = vmatprep.subr.bf16.mxu0 %v3153_v7 }
 0x102   : > { %899 = vmatpush1.bf16.msra.mxu1 %v3109_v33  ;;  %1083 = vmatmul.mubr.bf16.vlgmr.msra.gmra.mxu0 %v967_v37 }
 0x103   : > { %900 = vmatprep.subr.bf16.mxu1 %v3114_v35  ;;  %1092 = vmatprep.mubr.bf16.mxu0 %v3235_v36 }
 0x104   : > { %2808 = vmatpush3.bf16.msra.mxu0 %v3154_v8 }
 0x105   : > { %2809 = vmatprep.subr.bf16.mxu0 %v3157_v11 }
 0x106   : > { %901 = vmatpush1.bf16.msra.mxu1 %v3112_v38 }
 0x107   : > { %1210 = vmatprep.subr.bf16.mxu1 %v3117_v39 }
 0x108   : > { %2810 = vmatpush3.bf16.msra.mxu0 %v3158_v12 }
 0x109   : > { %919 = vmatmul.mubr.bf16.vlgmr.msra.gmra.mxu1 %v803_v44  ;;  %2811 = vmatprep.subr.bf16.mxu0 %v3159_v14 }
 0x10a   : > { %1093 = vmatmul.mubr.bf16.gmra.mxu0 %v966_v34  ;;  %1211 = vmatpush1.bf16.msra.mxu1 %v3115_v42 }
 0x10b   : > { %1212 = vmatprep.subr.bf16.mxu1 %v3120_v43  ;;  %928 = vmatprep.mubr.bf16.mxu1 %v3235_v36 }
 0x10c   : > { %2812 = vmatpush3.bf16.msra.mxu0 %v3160_v15 }
 0x10d   : > { %2813 = vmatprep.subr.bf16.mxu0 %v3161_v16 }
 0x10e   : > { %1213 = vmatpush1.bf16.msra.mxu1 %v3118_v45 }
 0x10f   : > { %1214 = vmatprep.subr.bf16.mxu1 %v3123_v46 }
 0x110   : > { %2814 = vmatpush3.bf16.msra.mxu0 %v3162_v17 }
 0x111   : > { %929 = vmatmul.mubr.bf16.gmra.mxu1 %v802_v41  ;;  %2815 = vmatprep.subr.bf16.mxu0 %v3163_v18 }
 0x112   : > { %1215 = vmatpush1.bf16.msra.mxu1 %v3121_v47  ;;  %1242 = vmatprep.mubr.bf16.mxu1 %v3235_v36 }
 0x113   : > { %1216 = vmatprep.subr.bf16.mxu1 %v3126_v48 }
 0x114   : > { %2816 = vmatpush3.bf16.msra.mxu0 %v3164_v19 }
 0x115   : > { %2817 = vmatprep.subr.bf16.mxu0 %v3165_v20 }
 0x116   : > { %1217 = vmatpush1.bf16.msra.mxu1 %v3124_v50 }
 0x117   : > { %1218 = vmatprep.subr.bf16.mxu1 %v3129_v51 }
 0x118   : > { %2818 = vmatpush3.bf16.msra.mxu0 %v3166_v21 }
 0x119   : > { %2819 = vmatprep.subr.bf16.mxu0 %v3167_v22 }
 0x11a   : > { %1219 = vmatpush1.bf16.msra.mxu1 %v3127_v52 }
 0x11b   : > { %1220 = vmatprep.subr.bf16.mxu1 %v3132_v53 }
 0x11c   : > { %2820 = vmatpush3.bf16.msra.mxu0 %v3168_v23 }
 0x11d   : > { %2821 = vmatprep.subr.bf16.mxu0 %v3169_v24 }
 0x11e   : > { %1221 = vmatpush1.bf16.msra.mxu1 %v3130_v54 }
 0x11f   : > { %1222 = vmatprep.subr.bf16.mxu1 %v3135_v55 }
 0x120   : > { %2822 = vmatpush3.bf16.msra.mxu0 %v3170_v25 }
 0x121   : > { %2863 = vmatprep.subr.bf16.mxu0 %v3171_v26 }
 0x122   : > { %1223 = vmatpush1.bf16.msra.mxu1 %v3133_v56 }
 0x123   : > { %1224 = vmatprep.subr.bf16.mxu1 %v3138_v57 }
 0x126   : > { %1225 = vmatpush1.bf16.msra.mxu1 %v3136_v58 }
 0x127   : > { %2835 = vmatprep.subr.bf16.mxu1 %v3139_v60 }
 0x129   : > { %1243 = vmatmul.mubr.bf16.vlgmr.msra.gmra.mxu1 %v3453_v63  ;;  %v3145_v63 = vld [vmem:[%s3906_s5 + $0x60] sm:$0xff]  }
 0x12a   : > { %1252 = vmatprep.mubr.bf16.mxu1 %v3235_v36  ;;  %2836 = vmatpush3.bf16.msra.mxu1 %v3140_v61  ;;  %v3142_v36 = vld [vmem:[%s3906_s5 + $0x30] sm:$0xff]  }
 0x12b   : > { %2837 = vmatprep.subr.bf16.mxu1 %v3141_v62  ;;  %v1269_v62 = vlaneseq }
 0x12e   : > { %2838 = vmatpush3.bf16.msra.mxu1 %v3142_v36  ;;  %v3701_v36 = vshrl.u32 %v1269_v62, 7 }
 0x12f   : > { %2839 = vmatprep.subr.bf16.mxu1 %v3143_v49 }
 0x130   : > { %v1345_v11 = vsub.s32 2, %v3701_v36  ;;  %v1297_v18 = vadd.s32 4294967294, %v3701_v36  ;;  %v3713_v19 = vadd.s32 16, %v3701_v36 }
 0x131   : > { %1253 = vmatmul.mubr.bf16.gmra.mxu1 %v1126_v59  ;;  %v3144_v59 = vld [vmem:[%s3906_s5 + $0x28] sm:$0xff]  }
 0x132   : > { %2840 = vmatpush3.bf16.msra.mxu1 %v3144_v59  ;;  %vm1334_vm5 = vcmp.lt.s32.totalorder %v1297_v18, 0 }
 0x133   : > { %2841 = vmatprep.subr.bf16.mxu1 %v3145_v63 }
 0x136   : > { %2842 = vmatpush3.bf16.msra.mxu1 %v3146_v0  ;;  %v1271_v0 = vsub.s32 0, %v3701_v36 }
 0x137   : > { %2843 = vmatprep.subr.bf16.mxu1 %v3147_v1  ;;  %v1267_v1 = vld [vmem:[%s3905_s4] sm:$0x3] }
 0x138   : > { %v1272_v7 = vrot.slane %v1267_v1, %v1271_v0 }
 0x13a   : > { %2844 = vmatpush3.bf16.msra.mxu1 %v3148_v2 }
 0x13b   : > { %2845 = vmatprep.subr.bf16.mxu1 %v3149_v3 }
 0x13e   : > { %2846 = vmatpush3.bf16.msra.mxu1 %v3150_v4  ;;  %v1275_v4 = vsub.s32 1, %v3701_v36 }
 0x13f   : > { %2847 = vmatprep.subr.bf16.mxu1 %v3151_v5 }
 0x140   : > { %v1276_v14 = vrot.slane %v1267_v1, %v1275_v4 }
 0x142   : > { %2848 = vmatpush3.bf16.msra.mxu1 %v3152_v6 }
 0x143   : > { %2849 = vmatprep.subr.bf16.mxu1 %v3155_v9 }
 0x146   : > { %2850 = vmatpush3.bf16.msra.mxu1 %v3156_v10 }
 0x147   : > { %2926 = vmatprep.subr.bf16.mxu1 %v3236_v13 }
 0x1a2   : > { %v764_v27 = vpop.f32.mrf.mxu0 }
 0x1a4   : > { %v766_v28 = vpop.f32.mrf.mxu0 }
 0x1a6   : > { %v768_v29 = vpop.f32.mrf.mxu0 }
 0x1a8   : > { %v770_v30 = vpop.f32.mrf.mxu0 }
 0x1a9   : > { %v633_v31 = vpop.f32.mrf.mxu1 }
 0x1aa   : > { %v774_v32 = vpop.f32.mrf.mxu0  ;;  %v765_v49 = vadd.f32 %v764_v27, %v633_v31 }
 0x1ab   : > { %v635_v33 = vpop.f32.mrf.mxu1 }
 0x1ac   : > { %v776_v34 = vpop.f32.mrf.mxu0  ;;  %v767_v59 = vadd.f32 %v766_v28, %v635_v33 }
 0x1ad   : > { %v637_v35 = vpop.f32.mrf.mxu1 }
 0x1ae   : > { %v778_v37 = vpop.f32.mrf.mxu0  ;;  %v769_v2 = vadd.f32 %v768_v29, %v637_v35 }
 0x1af   : > { %v639_v38 = vpop.f32.mrf.mxu1 }
 0x1b0   : > { %v779_v39 = vpop.f32.mrf.mxu0  ;;  %v771_v8 = vadd.f32 %v770_v30, %v639_v38 }
 0x1b1   : > { %v643_v40 = vpop.f32.mrf.mxu1 }
 0x1b2   : > { %v775_v15 = vadd.f32 %v774_v32, %v643_v40  ;;  %v1299_v32 = vadd.s32 4294967294, %v3713_v19 }
 0x1b3   : > { %v645_v41 = vpop.f32.mrf.mxu1 }
 0x1b4   : > { %v777_v20 = vadd.f32 %v776_v34, %v645_v41  ;;  %vm1302_vm6 = vcmp.eq.s32.totalorder %v1299_v32, 15  ;;  %vm1359_vm8 = vcmp.gt.s32.totalorder %v1299_v32, 15 }
 0x1b5   : > { %v647_v42 = vpop.f32.mrf.mxu1 }
 0x1b7   : > { %v648_v43 = vpop.f32.mrf.mxu1 }
 0x1c2   : > { %v1084_v44 = vpop.f32.mrf.mxu0 }
 0x1c4   : > { %v1086_v45 = vpop.f32.mrf.mxu0 }
 0x1c6   : > { %v1088_v46 = vpop.f32.mrf.mxu0 }
 0x1c8   : > { %v1090_v47 = vpop.f32.mrf.mxu0 }
 0x1c9   : > { %v920_v48 = vpop.f32.mrf.mxu1 }
 0x1ca   : > { %v1094_v50 = vpop.f32.mrf.mxu0  ;;  %v937_v63 = vadd.f32 %v920_v48, %v765_v49 }
 0x1cb   : > { %v922_v51 = vpop.f32.mrf.mxu1 }
 0x1cc   : > { %v1096_v52 = vpop.f32.mrf.mxu0  ;;  %v938_v3 = vadd.f32 %v922_v51, %v767_v59  ;;  %v1101_v6 = vadd.f32 %v1084_v44, %v937_v63 }
 0x1cd   : > { %v924_v53 = vpop.f32.mrf.mxu1 }
 0x1ce   : > { %v1098_v54 = vpop.f32.mrf.mxu0  ;;  %v939_v5 = vadd.f32 %v924_v53, %v769_v2  ;;  %v1102_v12 = vadd.f32 %v1086_v45, %v938_v3 }
 0x1cf   : > { %v926_v55 = vpop.f32.mrf.mxu1 }
 0x1d0   : > { %v1099_v56 = vpop.f32.mrf.mxu0  ;;  %v940_v16 = vadd.f32 %v926_v55, %v771_v8  ;;  %v1103_v23 = vadd.f32 %v1088_v46, %v939_v5 }
 0x1d1   : > { %v930_v57 = vpop.f32.mrf.mxu1 }
 0x1d2   : > { %v941_v24 = vadd.f32 %v930_v57, %v775_v15  ;;  %v1104_v30 = vadd.f32 %v1090_v47, %v940_v16 }
 0x1d3   : > { %v932_v58 = vpop.f32.mrf.mxu1 }
 0x1d4   : > { %v942_v26 = vadd.f32 %v932_v58, %v777_v20  ;;  %v1105_v39 = vadd.f32 %v1094_v50, %v941_v24  ;;  %v2628_v58 = vsel %vm1302_vm6, 1.0, %v3236_v13 }
 0x1d5   : > { %v934_v60 = vpop.f32.mrf.mxu1 }
 0x1d6   : > { %v1106_v43 = vadd.f32 %v1096_v52, %v942_v26 }
 0x1d7   : > { %v935_v61 = vpop.f32.mrf.mxu1 }
 0x1e9   : > { %v1244_v9 = vpop.f32.mrf.mxu1 }
 0x1ea   : > { %v1261_v10 = vadd.f32 %v1244_v9, %v1101_v6 }
 0x1eb   : > { %v1246_v17 = vpop.f32.mrf.mxu1 }
 0x1ec   : > { %v1279_v21 = vadd.f32 %v1272_v7, %v1261_v10  ;;  %v1262_v22 = vadd.f32 %v1246_v17, %v1102_v12 }
 0x1ed   : > { %v1248_v25 = vpop.f32.mrf.mxu1 }
 0x1ee   : > { %v1285_v27 = vmax.f32 %v1279_v21, 0.0  ;;  %v1280_v28 = vadd.f32 %v1276_v14, %v1262_v22  ;;  %v1263_v29 = vadd.f32 %v1248_v25, %v1103_v23 }
 0x1ef   : > { %v1250_v31 = vpop.f32.mrf.mxu1 }
 0x1f0   : > { %v1346_v33 = vrot.slane %v1285_v27, %v1345_v11  ;;  %v1286_v35 = vmax.f32 %v1280_v28, 0.0  ;;  %v1281_v37 = vadd.f32 %v1272_v7, %v1263_v29  ;;  %v1264_v38 = vadd.f32 %v1250_v31, %v1104_v30 }
 0x1f1   : > { %v1254_v34 = vpop.f32.mrf.mxu1  ;;  %v1309_v44 = vmul.f32 0.0, %v1285_v27 }
 0x1f2   : > { %v1350_v40 = vrot.slane %v1286_v35, %v1345_v11  ;;  %v1287_v41 = vmax.f32 %v1281_v37, 0.0  ;;  %v1351_v42 = vsel %vm1334_vm5, %v1346_v33, %v1285_v27  ;;  %v1282_v45 = vadd.f32 %v1276_v14, %v1264_v38 }
 0x1f3   : > { %v1265_v46 = vadd.f32 %v1254_v34, %v1105_v39  ;;  %v1256_v48 = vpop.f32.mrf.mxu1  ;;  %v1310_v61 = vmul.f32 0.0, %v1286_v35 }
 0x1f4   : > { %v1311_v47 = vmul.f32 0.0, %v1287_v41  ;;  %v1372_v51 = vpack.c.bf16 %v1287_v41, %v1351_v42  ;;  %v1352_v53 = vsel %vm1334_vm5, %v1350_v40, %v1286_v35  ;;  %v1266_v54 = vadd.f32 %v1256_v48, %v1106_v43  ;;  %v3172_v48 = vld [vmem:[%s3906_s5 + $0x138] sm:$0xff]  }
 0x1f5   : > { %v1288_v55 = vmax.f32 %v1282_v45, 0.0  ;;  %v1283_v56 = vadd.f32 %v1272_v7, %v1265_v46  ;;  %v1258_v57 = vpop.f32.mrf.mxu1 }
 0x1f6   : > { %v1315_v50 = vadd.f32 %v1311_v47, %v1309_v44  ;;  %v1284_v60 = vadd.f32 %v1276_v14, %v1266_v54  ;;  %v1444_v20 = vshll.u32 %v1372_v51, 16  ;;  %v1442_v30 = vshrl.u32 %v1372_v51, 16  ;;  %v3174_v54 = vld [vmem:[%s3906_s5 + $0x130] sm:$0xff]   ;;  %v3176_v57 = vld [vmem:[%s3906_s5 + $0x128] sm:$0xff]  }
 0x1f7   : > { %v1312_v62 = vmul.f32 0.0, %v1288_v55  ;;  %v1373_v52 = vpack.c.bf16 %v1288_v55, %v1352_v53  ;;  %v1289_v49 = vmax.f32 %v1283_v56, 0.0  ;;  %v1259_v59 = vpop.f32.mrf.mxu1  ;;  %v1800_v33 = vrot.slane %v1372_v51, 1  ;;  %v3173_v53 = vld [vmem:[%s3906_s5 + $0x170] sm:$0xff]   ;;  %v3175_v55 = vld [vmem:[%s3906_s5 + $0x168] sm:$0xff]  }
 0x1f8   : > { %v1290_v63 = vmax.f32 %v1284_v60, 0.0  ;;  %v1446_v27 = vrot.slane %v1444_v20, 1  ;;  %v3178_v60 = vld [vmem:[%s3906_s5 + $0x120] sm:$0xff]   ;;  %v3183_v59 = vld [vmem:[%s3906_s5 + $0x148] sm:$0xff]  }
 0x1f9   : > { %v1325_v0 = vadd.f32 %v1312_v62, %v1310_v61  ;;  %v1313_v1 = vmul.f32 %v2628_v58, %v1289_v49  ;;  %1747 = vmatprep.mubr.bf16.mxu1 %v1373_v52  ;;  %v1456_v22 = vshll.u32 %v1373_v52, 16  ;;  %v1454_v32 = vshrl.u32 %v1373_v52, 16  ;;  %v3179_v61 = vld [vmem:[%s3906_s5 + $0x158] sm:$0xff]   ;;  %v3202_v20 = vld [vmem:[%s3908_s7 + $0x40] sm:$0xff]  }
 0x1fa   : > { %v1314_v2 = vmul.f32 %v2628_v58, %v1290_v63  ;;  %1748 = vmatmul.mubr.bf16.vlgmr.msra.gmra.mxu1 %v1372_v51  ;;  %v1803_v38 = vrot.slane %v1373_v52, 1  ;;  %v1447_v34 = vor.u32 %v1446_v27, %v1442_v30  ;;  %v3177_v58 = vld [vmem:[%s3906_s5 + $0x160] sm:$0xff]   ;;  %v3180_v62 = vld [vmem:[%s3906_s5 + $0x118] sm:$0xff]   ;;  %v3181_v52 = vld [vmem:[%s3906_s5 + $0x150] sm:$0xff]  }
 0x1fb   : > { %v1317_v3 = vsel %vm1316_vm7, %v1313_v1, 0.0  ;;  %v1458_v29 = vrot.slane %v1456_v22, 1  ;;  %v3186_v1 = vld [vmem:[%s3906_s5 + $0x100] sm:$0xff]  }
 0x1fc   : > { %v1318_v5 = vadd.f32 %v1317_v3, %v1315_v50  ;;  %v1326_v6 = vsel %vm1316_vm7, %v1314_v2, 0.0  ;;  %v3187_v2 = vld [vmem:[%s3908_s7 + $0x38] sm:$0xff]   ;;  %v3188_v3 = vld [vmem:[%s3908_s7 + $0x30] sm:$0xff]  }
 0x1fd   : > { %v1327_v7 = vadd.f32 %v1326_v6, %v1325_v0  ;;  %v1459_v42 = vor.u32 %v1458_v29, %v1454_v32  ;;  %v3185_v0 = vld [vmem:[%s3906_s5 + $0x140] sm:$0xff]  }
 0x1fe   : > { %v1319_v8 = vrot.slane %v1318_v5, 4  ;;  %v3190_v6 = vld [vmem:[%s3908_s7 + $0x20] sm:$0xff]  }
 0x1ff   : > { %v1328_v9 = vrot.slane %v1327_v7, 4 }
 0x200   : > { %v1320_v10 = vadd.f32 %v1319_v8, %v1318_v5  ;;  %v3189_v5 = vld [vmem:[%s3908_s7 + $0x28] sm:$0xff]   ;;  %v3192_v8 = vld [vmem:[%s3908_s7 + $0x10] sm:$0xff]  }
 0x201   : > { %v1329_v11 = vadd.f32 %v1328_v9, %v1327_v7  ;;  %v3191_v7 = vld [vmem:[%s3908_s7 + $0x18] sm:$0xff]   ;;  %v3193_v9 = vld [vmem:[%s3908_s7 + $0x8] sm:$0xff]  }
 0x202   : > { %v1321_v12 = vrot.slane %v1320_v10, 2 }
 0x203   : > { %v1330_v14 = vrot.slane %v1329_v11, 2 }
 0x204   : > { %v1322_v15 = vadd.f32 %v1321_v12, %v1320_v10  ;;  %v3194_v10 = vld [vmem:[%s3908_s7 + $0x78] sm:$0xff]   ;;  %v3196_v12 = vld [vmem:[%s3908_s7 + $0x70] sm:$0xff]  }
 0x205   : > { %v1331_v16 = vadd.f32 %v1330_v14, %v1329_v11  ;;  %2927 = vmatpush3.bf16.msra.mxu1 %v3194_v10  ;;  %v3195_v11 = vld [vmem:[%s3908_s7] sm:$0xff]   ;;  %v3197_v14 = vld [vmem:[%s3908_s7 + $0x68] sm:$0xff]  }
 0x206   : > { %v1323_v17 = vrot.slane %v1322_v15, 1  ;;  %2928 = vmatprep.subr.bf16.mxu1 %v3236_v13 }
 0x207   : > { %v1332_v18 = vrot.slane %v1331_v16, 1 }
 0x208   : > { %v1324_v21 = vadd.f32 %v1323_v17, %v1322_v15  ;;  %v3198_v15 = vld [vmem:[%s3908_s7 + $0x60] sm:$0xff]   ;;  %v3200_v17 = vld [vmem:[%s3908_s7 + $0x50] sm:$0xff]  }
 0x209   : > { %v1333_v23 = vadd.f32 %v1332_v18, %v1331_v16  ;;  %2929 = vmatpush3.bf16.msra.mxu1 %v3196_v12  ;;  %v3199_v16 = vld [vmem:[%s3908_s7 + $0x58] sm:$0xff]   ;;  %v3201_v18 = vld [vmem:[%s3908_s7 + $0x48] sm:$0xff]  }
 0x20a   : > { %v1370_v24 = vsel %vm1359_vm8, %v1324_v21, %v1289_v49  ;;  %v3182_v49 = vld [vmem:[%s3906_s5 + $0x110] sm:$0xff]   ;;  %2930 = vmatprep.subr.bf16.mxu1 %v3236_v13 }
 0x20b   : > { %v1371_v25 = vsel %vm1359_vm8, %v1333_v23, %v1290_v63  ;;  %v3719_v26 = vpack.c.bf16 %v1370_v24, %v1370_v24  ;;  %v3184_v63 = vld [vmem:[%s3906_s5 + $0x108] sm:$0xff]  }
 0x20c   : > { %v1375_v28 = vpack.c.bf16 %v1371_v25, %v1371_v25 }
 0x20d   : > { %v1449_v31 = vshll.u32 %v3719_v26, 16  ;;  %v1801_v35 = vrot.slane %v3719_v26, 1  ;;  %v1465_v56 = vshrl.u32 %v3719_v26, 16  ;;  %2931 = vmatpush3.bf16.msra.mxu1 %v3197_v14 }
 0x20e   : > { %1755 = vmatprep.mubr.bf16.mxu1 %v1375_v28  ;;  %v1461_v37 = vshll.u32 %v1375_v28, 16  ;;  %v1804_v39 = vrot.slane %v1375_v28, 1  ;;  %v1468_v44 = vshrl.u32 %v1375_v28, 16  ;;  %2932 = vmatprep.subr.bf16.mxu1 %v3236_v13 }
 0x20f   : > { %1756 = vmatmul.mubr.bf16.gmra.mxu1 %v3719_v26  ;;  %v1451_v40 = vrot.slane %v1449_v31, 1  ;;  %v1802_v41 = vsel %vm800_vm4, %v1800_v33, %v1801_v35 }
 0x210   : > { %v1463_v43 = vrot.slane %v1461_v37, 1  ;;  %v1805_v45 = vsel %vm800_vm4, %v1803_v38, %v1804_v39  ;;  %2942 = vmatprep.mubr.msk.bf16.mxu1 %vm3237_vm9, %v3236_v13 }
 0x211   : > { %v1452_v46 = vsel %vm501_vm2, %v1447_v34, %v1451_v40  ;;  %v1467_v50 = vor.u32 %v1465_v56, %v1451_v40  ;;  %2933 = vmatpush3.bf16.msra.mxu1 %v3198_v15 }
 0x212   : > { %v1464_v47 = vsel %vm501_vm2, %v1459_v42, %v1463_v43  ;;  %v1470_v51 = vor.u32 %v1468_v44, %v1463_v43  ;;  %2934 = vmatprep.subr.bf16.mxu1 %v3236_v13 }
 0x213   : > { %1603 = vmatprep.mubr.bf16.mxu0 %v1464_v47 }
 0x214   : > { %1604 = vmatmul.mubr.bf16.vlgmr.msra.gmra.mxu0 %v1452_v46 }
 0x215   : > { %2864 = vmatpush3.bf16.msra.mxu0 %v3172_v48  ;;  %1611 = vmatprep.mubr.bf16.mxu0 %v1470_v51 }
 0x216   : > { %2865 = vmatprep.subr.bf16.mxu0 %v3173_v53  ;;  %2935 = vmatpush3.bf16.msra.mxu1 %v3199_v16  ;;  %v1972_v53 = vadd.s32 4294967295, %v3701_v36 }
 0x217   : > { %2936 = vmatprep.subr.bf16.mxu1 %v3236_v13 }
 0x218   : > { %vm1997_vm10 = vcmp.lt.s32.totalorder %v1972_v53, 0 }
 0x219   : > { %2866 = vmatpush3.bf16.msra.mxu0 %v3174_v54 }
 0x21a   : > { %2867 = vmatprep.subr.bf16.mxu0 %v3175_v55  ;;  %2937 = vmatpush3.bf16.msra.mxu1 %v3200_v17 }
 0x21b   : > { %2938 = vmatprep.subr.bf16.mxu1 %v3236_v13 }
 0x21c   : > { %1612 = vmatmul.mubr.bf16.gmra.mxu0 %v1467_v50 }
 0x21d   : > { %2868 = vmatpush3.bf16.msra.mxu0 %v3176_v57  ;;  %1938 = vmatprep.mubr.bf16.mxu0 %v1805_v45  ;;  %v2741_v45 = vld [vmem:[%s3907_s6] ss:$0 sm:$0xff] }
 0x21e   : > { %2869 = vmatprep.subr.bf16.mxu0 %v3177_v58  ;;  %2939 = vmatpush3.bf16.msra.mxu1 %v3201_v18 }
 0x21f   : > { %2940 = vmatprep.subr.bf16.mxu1 %v3236_v13 }
 0x221   : > { %2870 = vmatpush3.bf16.msra.mxu0 %v3178_v60 }
 0x222   : > { %2871 = vmatprep.subr.bf16.mxu0 %v3179_v61  ;;  %2941 = vmatpush3.bf16.msra.mxu1 %v3202_v20 }
 0x223   : > { %2966 = vmatprep.subr.bf16.mxu1 %v3236_v13 }
 0x225   : > { %2872 = vmatpush3.bf16.msra.mxu0 %v3180_v62  ;;  %v1974_v62 = vadd.s32 4294967295, %v3713_v19 }
 0x226   : > { %2873 = vmatprep.subr.bf16.mxu0 %v3181_v52 }
 0x227   : > { %vm1977_vm11 = vcmp.eq.s32.totalorder %v1974_v62, 15  ;;  %vm2015_vm13 = vcmp.gt.s32.totalorder %v1974_v62, 15 }
 0x228   : > { %v2742_v10 = vsel %vm1977_vm11, 1.0, %v3236_v13 }
 0x229   : > { %2874 = vmatpush3.bf16.msra.mxu0 %v3182_v49 }
 0x22a   : > { %2875 = vmatprep.subr.bf16.mxu0 %v3183_v59 }
 0x22d   : > { %2876 = vmatpush3.bf16.msra.mxu0 %v3184_v63 }
 0x22e   : > { %2877 = vmatprep.subr.bf16.mxu0 %v3185_v0 }
 0x231   : > { %2878 = vmatpush3.bf16.msra.mxu0 %v3186_v1 }
 0x232   : > { %2946 = vmatprep.subr.bf16.mxu0 %v3236_v13 }
 0x234   : > { %1939 = vmatmul.mubr.bf16.vlgmr.msra.gmra.mxu0 %v1802_v41 }
 0x235   : > { %1946 = vmatprep.mubr.bf16.mxu0 %v1804_v39  ;;  %2947 = vmatpush3.bf16.msra.mxu0 %v3187_v2 }
 0x236   : > { %2948 = vmatprep.subr.bf16.mxu0 %v3236_v13 }
 0x239   : > { %2949 = vmatpush3.bf16.msra.mxu0 %v3188_v3 }
 0x23a   : > { %2950 = vmatprep.subr.bf16.mxu0 %v3236_v13 }
 0x23c   : > { %1947 = vmatmul.mubr.bf16.gmra.mxu0 %v1801_v35 }
 0x23d   : > { %2951 = vmatpush3.bf16.msra.mxu0 %v3189_v5  ;;  %2962 = vmatprep.mubr.msk.bf16.mxu0 %vm3237_vm9, %v3236_v13 }
 0x23e   : > { %2952 = vmatprep.subr.bf16.mxu0 %v3236_v13 }
 0x241   : > { %2953 = vmatpush3.bf16.msra.mxu0 %v3190_v6 }
 0x242   : > { %2954 = vmatprep.subr.bf16.mxu0 %v3236_v13 }
 0x245   : > { %2955 = vmatpush3.bf16.msra.mxu0 %v3191_v7 }
 0x246   : > { %2956 = vmatprep.subr.bf16.mxu0 %v3236_v13 }
 0x249   : > { %2957 = vmatpush3.bf16.msra.mxu0 %v3192_v8 }
 0x24a   : > { %2958 = vmatprep.subr.bf16.mxu0 %v3236_v13 }
 0x24d   : > { %2959 = vmatpush3.bf16.msra.mxu0 %v3193_v9 }
 0x24e   : > { %2960 = vmatprep.subr.bf16.mxu0 %v3236_v13 }
 0x251   : > { %2961 = vmatpush3.bf16.msra.mxu0 %v3195_v11 }
 0x2ba   : > { %v2851_v21 = vpop.f32.mrf.mxu1 }
 0x2bc   : > { %v2852_v22 = vpop.f32.mrf.mxu1 }
 0x2bd   : > { %v2853_v40 = vadd.f32 %v2852_v22, %v2851_v21 }
 0x2be   : > { %v2854_v23 = vpop.f32.mrf.mxu1 }
 0x2c0   : > { %v2855_v24 = vpop.f32.mrf.mxu1 }
 0x2c1   : > { %v2856_v48 = vadd.f32 %v2855_v24, %v2854_v23 }
 0x2cf   : > { %v2857_v25 = vpop.f32.mrf.mxu1 }
 0x2d1   : > { %v2858_v26 = vpop.f32.mrf.mxu1 }
 0x2d2   : > { %v2859_v58 = vadd.f32 %v2858_v26, %v2857_v25 }
 0x2d3   : > { %v2860_v27 = vpop.f32.mrf.mxu1 }
 0x2d4   : > { %v2823_v28 = vpop.f32.mrf.mxu0 }
 0x2d5   : > { %v2861_v29 = vpop.f32.mrf.mxu1 }
 0x2d6   : > { %v2824_v30 = vpop.f32.mrf.mxu0 }
 0x2d7   : > { %v2825_v39 = vadd.f32 %v2824_v30, %v2823_v28  ;;  %v3203_v30 = vld [vmem:[%s3908_s7 + $0xb8] sm:$0xff]  }
 0x2d8   : > { %v2826_v31 = vpop.f32.mrf.mxu0 }
 0x2d9   : > { %v1750_v42 = vadd.f32 %v2853_v40, %v2825_v39  ;;  %v3209_v39 = vld [vmem:[%s3908_s7 + $0x88] sm:$0xff]  }
 0x2da   : > { %v2827_v33 = vpop.f32.mrf.mxu0 }
 0x2db   : > { %v2828_v43 = vadd.f32 %v2827_v33, %v2826_v31  ;;  %v3204_v33 = vld [vmem:[%s3908_s7 + $0xb0] sm:$0xff]  }
 0x2dc   : > { %v2829_v35 = vpop.f32.mrf.mxu0 }
 0x2dd   : > { %v1753_v54 = vadd.f32 %v2856_v48, %v2828_v43 }
 0x2de   : > { %v2830_v32 = vpop.f32.mrf.mxu0 }
 0x2df   : > { %v2831_v55 = vadd.f32 %v2830_v32, %v2829_v35  ;;  %v3205_v35 = vld [vmem:[%s3908_s7 + $0xa8] sm:$0xff]   ;;  %v3206_v32 = vld [vmem:[%s3908_s7 + $0xa0] sm:$0xff]  }
 0x2e0   : > { %v2832_v37 = vpop.f32.mrf.mxu0 }
 0x2e1   : > { %v1758_v49 = vadd.f32 %v2859_v58, %v2831_v55  ;;  %v3207_v37 = vld [vmem:[%s3908_s7 + $0x98] sm:$0xff]  }
 0x2e2   : > { %v2833_v38 = vpop.f32.mrf.mxu0 }
 0x2e3   : > { %v3208_v38 = vld [vmem:[%s3908_s7 + $0x90] sm:$0xff]  }
 0x2f4   : > { %v2879_v34 = vpop.f32.mrf.mxu0 }
 0x2f6   : > { %v2880_v41 = vpop.f32.mrf.mxu0 }
 0x2f7   : > { %v2881_v44 = vadd.f32 %v2880_v41, %v2879_v34  ;;  %v3210_v34 = vld [vmem:[%s3908_s7 + $0x80] sm:$0xff]  }
 0x2f8   : > { %v2882_v46 = vpop.f32.mrf.mxu0 }
 0x2f9   : > { %v1954_v47 = vadd.f32 %v2881_v44, %v1750_v42 }
 0x2fa   : > { %v2883_v51 = vpop.f32.mrf.mxu0 }
 0x2fb   : > { %v1964_v56 = vadd.f32 %v2741_v45, %v1954_v47  ;;  %v2884_v57 = vadd.f32 %v2883_v51, %v2882_v46 }
 0x2fc   : > { %v2885_v50 = vpop.f32.mrf.mxu0 }
 0x2fd   : > { %v1967_v60 = vmax.f32 %v1964_v56, 0.0  ;;  %v1955_v61 = vadd.f32 %v2884_v57, %v1753_v54 }
 0x2fe   : > { %v2886_v52 = vpop.f32.mrf.mxu0 }
 0x2ff   : > { %v2009_v59 = vrot.slane %v1967_v60, %v1275_v4  ;;  %v1965_v63 = vadd.f32 %v2741_v45, %v1955_v61  ;;  %v2887_v0 = vadd.f32 %v2886_v52, %v2885_v50  ;;  %v1984_v11 = vmul.f32 0.0, %v1967_v60 }
 0x300   : > { %v2888_v1 = vpop.f32.mrf.mxu0 }
 0x301   : > { %v1968_v2 = vmax.f32 %v1965_v63, 0.0  ;;  %v2010_v3 = vsel %vm1997_vm10, %v2009_v59, %v1967_v60  ;;  %v1956_v5 = vadd.f32 %v2887_v0, %v1758_v49 }
 0x302   : > { %v2889_v6 = vpop.f32.mrf.mxu0 }
 0x303   : > { %v2025_v7 = vpack.c.bf16 %v1968_v2, %v2010_v3  ;;  %v1966_v8 = vadd.f32 %v2741_v45, %v1956_v5  ;;  %v1985_v9 = vmul.f32 0.0, %v1968_v2 }
 0x305   : > { %v1969_v19 = vmax.f32 %v1966_v8, 0.0  ;;  %2963 = vmatmul.mubr.bf16.vlgmr.msra.gmra.mxu0 %v2025_v7  ;;  %v1987_v36 = vadd.f32 %v1985_v9, %v1984_v11  ;;  %v2063_v21 = vshll.u32 %v2025_v7, 16  ;;  %v2061_v26 = vshrl.u32 %v2025_v7, 16 }
 0x306   : > { %v2270_v41 = vrot.slane %v2025_v7, 1 }
 0x307   : > { %v1986_v12 = vmul.f32 %v2742_v10, %v1969_v19  ;;  %v2065_v25 = vrot.slane %v2063_v21, 1 }
 0x309   : > { %v1989_v4 = vsel %vm1988_vm12, %v1986_v12, 0.0  ;;  %v2066_v28 = vor.u32 %v2065_v25, %v2061_v26 }
 0x30a   : > { %v1990_v14 = vadd.f32 %v1989_v4, %v1987_v36 }
 0x30c   : > { %v1991_v15 = vrot.slane %v1990_v14, 4 }
 0x30e   : > { %v1992_v16 = vadd.f32 %v1991_v15, %v1990_v14 }
 0x310   : > { %v1993_v17 = vrot.slane %v1992_v16, 2 }
 0x312   : > { %v1994_v18 = vadd.f32 %v1993_v17, %v1992_v16 }
 0x314   : > { %v1995_v20 = vrot.slane %v1994_v18, 1 }
 0x316   : > { %v1996_v22 = vadd.f32 %v1995_v20, %v1994_v18 }
 0x318   : > { %v2024_v23 = vsel %vm2015_vm13, %v1996_v22, %v1969_v19 }
 0x319   : > { %v2026_v24 = vpack.c.bf16 %v2024_v23, %v2024_v23 }
 0x31b   : > { %v2068_v27 = vshll.u32 %v2026_v24, 16  ;;  %v2271_v40 = vrot.slane %v2026_v24, 1 }
 0x31d   : > { %v2070_v29 = vrot.slane %v2068_v27, 1  ;;  %v2272_v42 = vsel %vm800_vm4, %v2270_v41, %v2271_v40 }
 0x31f   : > { %v2071_v31 = vsel %vm501_vm2, %v2066_v28, %v2070_v29 }
 0x320   : > { %2943 = vmatmul.mubr.bf16.vlgmr.msra.gmra.mxu1 %v2071_v31 }
 0x321   : > { %2967 = vmatpush3.bf16.msra.mxu1 %v3203_v30  ;;  %2982 = vmatprep.mubr.msk.bf16.mxu1 %vm3237_vm9, %v3236_v13 }
 0x322   : > { %2968 = vmatprep.subr.bf16.mxu1 %v3236_v13 }
 0x325   : > { %2969 = vmatpush3.bf16.msra.mxu1 %v3204_v33 }
 0x326   : > { %2970 = vmatprep.subr.bf16.mxu1 %v3236_v13 }
 0x329   : > { %2971 = vmatpush3.bf16.msra.mxu1 %v3205_v35 }
 0x32a   : > { %2972 = vmatprep.subr.bf16.mxu1 %v3236_v13 }
 0x32d   : > { %2973 = vmatpush3.bf16.msra.mxu1 %v3206_v32 }
 0x32e   : > { %2974 = vmatprep.subr.bf16.mxu1 %v3236_v13 }
 0x331   : > { %2975 = vmatpush3.bf16.msra.mxu1 %v3207_v37 }
 0x332   : > { %2976 = vmatprep.subr.bf16.mxu1 %v3236_v13 }
 0x335   : > { %2977 = vmatpush3.bf16.msra.mxu1 %v3208_v38 }
 0x336   : > { %2978 = vmatprep.subr.bf16.mxu1 %v3236_v13 }
 0x339   : > { %2979 = vmatpush3.bf16.msra.mxu1 %v3209_v39 }
 0x33a   : > { %2980 = vmatprep.subr.bf16.mxu1 %v3236_v13  ;;  %v2799_v13 = vld [vmem:[%s3909_s8] ss:$0 sm:$0xff] }
 0x33d   : > { %2981 = vmatpush3.bf16.msra.mxu1 %v3210_v34 }
 0x340   : > { %2983 = vmatmul.mubr.bf16.vlgmr.msra.gmra.mxu1 %v2272_v42 }
 0x3c5   : > { %v2244_v43 = vpop.f32.mrf.mxu0 }
 0x3c7   : > { %v2964_v44 = vpop.f32.mrf.mxu0 }
 0x3c9   : > { %v2247_v45 = vpop.f32.mrf.mxu0 }
 0x3cb   : > { %v2965_v46 = vpop.f32.mrf.mxu0 }
 0x3e0   : > { %v2155_v48 = vpop.f32.mrf.mxu1 }
 0x3e1   : > { %v2245_v54 = vadd.f32 %v2244_v43, %v2155_v48 }
 0x3e2   : > { %v2944_v47 = vpop.f32.mrf.mxu1 }
 0x3e4   : > { %v2158_v51 = vpop.f32.mrf.mxu1 }
 0x3e5   : > { %v2248_v50 = vadd.f32 %v2247_v45, %v2158_v51 }
 0x3e6   : > { %v2945_v53 = vpop.f32.mrf.mxu1 }
 0x400   : > { %v2356_v55 = vpop.f32.mrf.mxu1 }
 0x401   : > { %v2363_v56 = vadd.f32 %v2356_v55, %v2245_v54 }
 0x402   : > { %v2984_v57 = vpop.f32.mrf.mxu1 }
 0x403   : > { %v2372_v58 = vadd.f32 %v2799_v13, %v2363_v56 }
 0x404   : > { %v2359_v60 = vpop.f32.mrf.mxu1 }
 0x405   : > { %2375 = vst.msk [vmem:[%s368_s13] sm:$0xff] %vm2374_vm14, %v2372_v58  ;;  %v2364_v61 = vadd.f32 %v2359_v60, %v2248_v50 }
 0x406   : > { %v2985_v62 = vpop.f32.mrf.mxu1 }
 0x407   : > { %v2373_v52 = vadd.f32 %v2799_v13, %v2364_v61 }
 0x409   : > { %2376 = vst.msk [vmem:[%s368_s13 + $0x8] sm:$0xff] %vm2374_vm14, %v2373_v52 }
 0x40a PF: > { %s19_s11 = sadd.s32 1, %s3233_s11   ;;  %s3911_s30 = smov %s3229_s10 }
 0x40b   : > { %p16_p5 = scmp.ge.s32.totalorder %s19_s11, 4   ;;  %s3912_s10 = smov %s3914_s12 }
 0x40d   :  { %18 = sbr.rel (!%p16_p5) target bundleno = 2 (0x2), region = 94 }

</bundles_post_ra>
